<compile_context>
chip_gen: v7x
topology: tpu7x:2x2x1
jax: 0.10.0
libtpu: 0.0.40
codegen_flags: <defaults>
</compile_context>

<pallas_src>
import functools

import jax
import jax.numpy as jnp
from jax.experimental import pallas as pl
from jax.experimental.pallas import tpu as pltpu


# ------------------------------ small helpers -------------------------------

def _vmem_limit_bytes():
    # Derive the scoped-VMEM request from the actual part (v7x: 64 MiB physical
    # vs 128 MiB on v5e/v6e) instead of hard-coding, leaving headroom for the
    # double-buffered I/O blocks and compiler scratch.
    try:
        cap = pltpu.get_tpu_info().vmem_capacity_bytes
    except Exception:
        cap = 64 * 1024 * 1024
    return int(min(cap * 3 // 4, 100 * 1024 * 1024))


def _pick_chunk(total, max_lanes):
    """Largest divisor of `total` <= max_lanes, preferring multiples of 128."""
    if total <= max_lanes:
        return total
    for cand in range(max_lanes - max_lanes % 128, 0, -128):
        if total % cand == 0:
            return cand
    for cand in range(max_lanes, 0, -1):
        if total % cand == 0:
            return cand
    return total


# ----------------------------- Pallas kernels ------------------------------

def _sk_rdb_kernel(x_ref, masks_ref, idw_ref, idb_ref, cw_ref, cb_ref,
                   wdu_ref, alpha_ref, wfc_ref, lffw_ref, lffb_ref,
                   o_ref, hpad_ref, taps_ref, *, num_layers, W, inv_hw,
                   tap_chunk):
    """Whole SK_RDB block for one batch element, fully resident in VMEM."""
    Cp = x_ref.shape[1]                 # channel count padded to multiple of 16
    HW = x_ref.shape[2]
    n_chunks = HW // tap_chunk
    bf16 = jnp.bfloat16

    x = x_ref[0]                                               # (Cp, HW) f32

    # --- identity branch: res = id_w @ x + id_b (bf16 operands, f32 acc) ---
    res = jnp.dot(idw_ref[...], x.astype(bf16),
                  preferred_element_type=jnp.float32) + idb_ref[...]

    mask_l = masks_ref[0:1, :]          # zero where col == 0      (dx = -1)
    mask_r = masks_ref[1:2, :]          # zero where col == W - 1  (dx = +1)

    # Padded flat layout: [0, W+1) zeros | h (HW elems) | (W+1) zeros.
    # Zero only the two pad slabs (interior is rewritten every layer).
    zpad = jnp.zeros((Cp, W + 1), jnp.float32)
    hpad_ref[:, pl.ds(0, W + 1)] = zpad
    hpad_ref[:, pl.ds(W + 1 + HW, W + 1)] = zpad

    h = x
    for l in range(num_layers):
        cw = cw_ref[l]                  # (Cp, 9*Cp) bf16
        cb = cb_ref[l]                  # (Cp, 1)    f32
        hpad_ref[:, pl.ds(W + 1, HW)] = h

        # ---- conv3x3: per HW chunk, build 9 shifted bf16 taps (aligned full
        # vreg stores, since Cp % 16 == 0) then ONE folded MXU dot of
        # contraction depth 9*Cp. The taps scratch only ever holds one chunk.
        x1_chunks = []
        for ci in range(n_chunks):
            c0 = ci * tap_chunk
            for dy in range(3):
                for dx in range(3):
                    t = dy * 3 + dx
                    tap = hpad_ref[:, pl.ds(dy * W + dx + c0, tap_chunk)]
                    if dx == 0:
                        tap = tap * mask_l[:, c0:c0 + tap_chunk]
                    elif dx == 2:
                        tap = tap * mask_r[:, c0:c0 + tap_chunk]
                    taps_ref[pl.ds(t * Cp, Cp), :] = tap.astype(bf16)
            acc = jnp.dot(cw, taps_ref[...],
                          preferred_element_type=jnp.float32)
            x1_chunks.append(jnp.maximum(acc + cb, 0.0))       # ReLU
        x1 = (x1_chunks[0] if n_chunks == 1
              else jnp.concatenate(x1_chunks, axis=-1))        # (Cp, HW) f32

        # ---- SKFF(h, x1), height = 2; the two fc convs are one merged dot ----
        s = jnp.sum(h + x1, axis=1, keepdims=True) * inv_hw            # (Cp,1)
        z = jnp.dot(wdu_ref[l], s.astype(bf16),
                    preferred_element_type=jnp.float32)                # (d, 1)
        z = jnp.where(z >= 0.0, z, alpha_ref[l] * z)                   # PReLU
        a = jnp.dot(wfc_ref[l], z.astype(bf16),
                    preferred_element_type=jnp.float32)                # (2Cp,1)
        a0, a1 = a[:Cp], a[Cp:]
        m = jnp.maximum(a0, a1)
        e0 = jnp.exp(a0 - m)
        e1 = jnp.exp(a1 - m)
        # approx reciprocal (EUP slot): ~1e-3 rel error on the attention
        # weights, acceptable and covered by the test tolerance.
        inv = pl.reciprocal(e0 + e1, approx=True)
        h = h * (e0 * inv) + x1 * (e1 * inv)

    # --- lff 1x1 conv + residual (fused epilogue, lane-dense f32 store) ---
    out = jnp.dot(lffw_ref[...], h.astype(bf16),
                  preferred_element_type=jnp.float32)
    o_ref[0] = (out + lffb_ref[...] + res).astype(o_ref.dtype)


def _conv1x1_kernel(x_ref, w_ref, bias_ref, o_ref):
    acc = jnp.dot(w_ref[...], x_ref[0].astype(jnp.bfloat16),
                  preferred_element_type=jnp.float32)
    o_ref[0] = (acc + bias_ref[...]).astype(o_ref.dtype)


# ----------------------------- Pallas wrappers ------------------------------

def sk_rdb_block(x_flat, params, W):
    """x_flat: (B, Cin, H*W) NCHW-flattened input; returns (B, Cout, H*W)."""
    B, Cin, HW = x_flat.shape
    Cout = params["id_w"].shape[0]
    layers = params["layers"]
    L = len(layers)
    d = layers[0]["wdu"].shape[0]

    # Pad channels to a multiple of 16 so bf16 tap stores are packed-vreg
    # aligned; padded channels stay exactly zero through the whole block.
    ALIGN = 16
    Cp = ((Cin + ALIGN - 1) // ALIGN) * ALIGN
    pc = Cp - Cin

    def pad_cols(w):                                   # (rows, Cin)->(rows, Cp)
        return jnp.pad(w, ((0, 0), (0, pc))) if pc else w

    xp = jnp.pad(x_flat, ((0, 0), (0, pc), (0, 0))) if pc else x_flat

    # host-side weight folding (1x1 squeeze, 3x3 -> (Cp, 9*Cp), fc merge) in
    # bf16 for every MXU operand; biases / PReLU alpha stay f32.
    id_w = pad_cols(params["id_w"][:, :, 0, 0]).astype(jnp.bfloat16)
    id_b = params["id_b"].reshape(Cout, 1).astype(jnp.float32)
    lff_w = pad_cols(params["lff_w"][:, :, 0, 0]).astype(jnp.bfloat16)
    lff_b = params["lff_b"].reshape(Cout, 1).astype(jnp.float32)

    conv_w9, conv_b, wdu, alpha, wfc = [], [], [], [], []
    for lp in layers:
        cw = lp["conv_w"]
        if pc:
            cw = jnp.pad(cw, ((0, pc), (0, pc), (0, 0), (0, 0)))
        conv_w9.append(cw.transpose(0, 2, 3, 1).reshape(Cp, 9 * Cp))
        cb = jnp.pad(lp["conv_b"], ((0, pc),)) if pc else lp["conv_b"]
        conv_b.append(cb.reshape(Cp, 1))
        wdu.append(pad_cols(lp["wdu"][:, :, 0, 0]))
        alpha.append(jnp.reshape(lp["alpha"], (1, 1)))
        f0, f1 = lp["wfc0"][:, :, 0, 0], lp["wfc1"][:, :, 0, 0]
        if pc:
            f0 = jnp.pad(f0, ((0, pc), (0, 0)))
            f1 = jnp.pad(f1, ((0, pc), (0, 0)))
        wfc.append(jnp.concatenate([f0, f1], axis=0))          # (2*Cp, d)
    conv_w9 = jnp.stack(conv_w9).astype(jnp.bfloat16)          # (L, Cp, 9Cp)
    conv_b = jnp.stack(conv_b).astype(jnp.float32)             # (L, Cp, 1)
    wdu = jnp.stack(wdu).astype(jnp.bfloat16)                  # (L, d, Cp)
    alpha = jnp.stack(alpha).astype(jnp.float32)               # (L, 1, 1)
    wfc = jnp.stack(wfc).astype(jnp.bfloat16)                  # (L, 2Cp, d)

    # column-edge masks for the horizontal tap shifts (precomputed, constant)
    col = jnp.arange(HW, dtype=jnp.int32) % W
    masks = jnp.stack([(col != 0), (col != W - 1)], axis=0).astype(jnp.float32)

    # bound the bf16 taps scratch (9*Cp x chunk) to ~4 MiB per chunk
    max_lanes = max(128, ((4 << 20) // (2 * 9 * Cp)) // 128 * 128)
    tap_chunk = _pick_chunk(HW, max_lanes)

    cost = pl.CostEstimate(
        flops=int(B * (2 * 9 * Cp * Cp * HW * L + 2 * 2 * Cout * Cp * HW)),
        transcendentals=int(B * L * 3 * Cp),
        bytes_accessed=int(4 * B * (Cp + Cout) * HW
                           + 2 * (conv_w9.size + wdu.size + wfc.size
                                  + id_w.size + lff_w.size)),
    )

    kernel = functools.partial(_sk_rdb_kernel, num_layers=L, W=W,
                               inv_hw=1.0 / HW, tap_chunk=tap_chunk)
    return pl.pallas_call(
        kernel,
        grid=(B,),
        in_specs=[
            pl.BlockSpec((1, Cp, HW), lambda b: (b, 0, 0)),        # x
            pl.BlockSpec((2, HW), lambda b: (0, 0)),               # edge masks
            pl.BlockSpec((Cout, Cp), lambda b: (0, 0)),            # id_w  bf16
            pl.BlockSpec((Cout, 1), lambda b: (0, 0)),             # id_b
            pl.BlockSpec((L, Cp, 9 * Cp), lambda b: (0, 0, 0)),    # conv  bf16
            pl.BlockSpec((L, Cp, 1), lambda b: (0, 0, 0)),         # conv_b
            pl.BlockSpec((L, d, Cp), lambda b: (0, 0, 0)),         # wdu   bf16
            pl.BlockSpec((L, 1, 1), lambda b: (0, 0, 0)),          # alpha
            pl.BlockSpec((L, 2 * Cp, d), lambda b: (0, 0, 0)),     # wfc   bf16
            pl.BlockSpec((Cout, Cp), lambda b: (0, 0)),            # lff_w bf16
            pl.BlockSpec((Cout, 1), lambda b: (0, 0)),             # lff_b
        ],
        out_specs=pl.BlockSpec((1, Cout, HW), lambda b: (b, 0, 0)),
        out_shape=jax.ShapeDtypeStruct((B, Cout, HW), jnp.float32),
        scratch_shapes=[
            pltpu.VMEM((Cp, HW + 2 * W + 2), jnp.float32),   # padded flat h
            pltpu.VMEM((9 * Cp, tap_chunk), jnp.bfloat16),   # folded bf16 taps
        ],
        compiler_params=pltpu.CompilerParams(
            dimension_semantics=("parallel",),
            vmem_limit_bytes=_vmem_limit_bytes(),
        ),
        cost_estimate=cost,
    )(xp, masks, id_w, id_b, conv_w9, conv_b, wdu, alpha, wfc, lff_w, lff_b)


def conv1x1(x_flat, w, bias, *, max_lanes=4096):
    """x_flat: (B, Cin, HW) (any float dtype); w: (Cout, Cin); bias: (Cout,)."""
    B, Cin, HW = x_flat.shape
    Cout = w.shape[0]
    t = _pick_chunk(HW, max_lanes)
    cost = pl.CostEstimate(
        flops=int(2 * B * Cout * Cin * HW),
        transcendentals=0,
        bytes_accessed=int(B * Cin * HW * x_flat.dtype.itemsize
                           + 4 * B * Cout * HW + 2 * Cout * Cin),
    )
    return pl.pallas_call(
        _conv1x1_kernel,
        grid=(B, HW // t),
        in_specs=[
            pl.BlockSpec((1, Cin, t), lambda b, j: (b, 0, j)),
            pl.BlockSpec((Cout, Cin), lambda b, j: (0, 0)),
            pl.BlockSpec((Cout, 1), lambda b, j: (0, 0)),
        ],
        out_specs=pl.BlockSpec((1, Cout, t), lambda b, j: (b, 0, j)),
        out_shape=jax.ShapeDtypeStruct((B, Cout, HW), jnp.float32),
        compiler_params=pltpu.CompilerParams(
            dimension_semantics=("parallel", "parallel"),
            vmem_limit_bytes=_vmem_limit_bytes(),
        ),
        cost_estimate=cost,
    )(x_flat, w.astype(jnp.bfloat16),
      bias.reshape(Cout, 1).astype(jnp.float32))


# ------------------------------- JAX glue -----------------------------------

def unet_conv_block_forward(x, params, downsample=True):
    """Pallas implementation of UNetConvBlock.forward (x is NCHW)."""
    B, Cin, H, W = x.shape
    HW = H * W
    out_flat = sk_rdb_block(x.reshape(B, Cin, HW), params, W)
    Cout = out_flat.shape[1]
    out = out_flat.reshape(B, Cout, H, W)

    if downsample:
        r = 2
        # TODO(synk): fuse the PixelUnshuffle into the Pallas epilogue — the
        # stride-2 column de-interleave needs a lane-strided gather with no
        # clean Mosaic lowering, so the rearrange stays in XLA (in bf16 so the
        # extra pass moves half the bytes); the 1x1 conv + bias is Pallas.
        xu = out.reshape(B, Cout, H // r, r, W // r, r)
        xu = xu.transpose(0, 1, 3, 5, 2, 4).reshape(B, Cout * r * r,
                                                    (H // r) * (W // r))
        od = conv1x1(xu.astype(jnp.bfloat16),
                     params["ps_w"][:, :, 0, 0], params["ps_b"])
        return od.reshape(B, Cout, H // r, W // r), out
    return out


# ----------------------- deterministic parameter init -----------------------

def init_params(key, in_size, out_size, num_layers=3, downsample=True):
    kit = iter(jax.random.split(key, 64))

    def nrm(shape, scale=0.1):
        return scale * jax.random.normal(next(kit), shape, dtype=jnp.float32)

    d = max(in_size // 8, 4)  # SKFF reduction=8 bottleneck width
    params = {
        "id_w": nrm((out_size, in_size, 1, 1)),
        "id_b": nrm((out_size,)),
        "lff_w": nrm((out_size, in_size, 1, 1)),
        "lff_b": nrm((out_size,)),
        "layers": [],
    }
    for _ in range(num_layers):
        params["layers"].append({
            "conv_w": nrm((in_size, in_size, 3, 3)),
            "conv_b": nrm((in_size,)),
            "wdu": nrm((d, in_size, 1, 1)),          # SKFF conv_du (bias=False)
            "alpha": jnp.array(0.25, jnp.float32),   # PReLU default init
            "wfc0": nrm((in_size, d, 1, 1)),         # SKFF fcs[0] (bias=False)
            "wfc1": nrm((in_size, d, 1, 1)),         # SKFF fcs[1] (bias=False)
        })
    if downsample:
        params["ps_w"] = nrm((out_size, 4 * out_size, 1, 1))
        params["ps_b"] = nrm((out_size,))
    return params


# ------------------------ pure-JAX reference (check) -------------------------

def _ref_conv2d(x, w, b, pad):
    y = jax.lax.conv_general_dilated(
        x, w, window_strides=(1, 1), padding=[(pad, pad), (pad, pad)],
        dimension_numbers=("NCHW", "OIHW", "NCHW"),
        precision=jax.lax.Precision.HIGHEST)
    if b is not None:
        y = y + b[None, :, None, None]
    return y


def _ref_skff(x, x1, wdu, alpha, w0, w1):
    u = x + x1
    s = jnp.mean(u, axis=(2, 3), keepdims=True)
    z = _ref_conv2d(s, wdu, None, 0)
    z = jnp.where(z >= 0, z, alpha * z)
    a = jnp.stack([_ref_conv2d(z, w0, None, 0),
                   _ref_conv2d(z, w1, None, 0)], axis=1)
    a = jax.nn.softmax(a, axis=1)
    return x * a[:, 0] + x1 * a[:, 1]


def ref_forward(x, params, downsample=True):
    res = _ref_conv2d(x, params["id_w"], params["id_b"], 0)
    h = x
    for lp in params["layers"]:
        x1 = jax.nn.relu(_ref_conv2d(h, lp["conv_w"], lp["conv_b"], 1))
        h = _ref_skff(h, x1, lp["wdu"], lp["alpha"], lp["wfc0"], lp["wfc1"])
    out = res + _ref_conv2d(h, params["lff_w"], params["lff_b"], 0)
    if downsample:
        B, C, H, W = out.shape
        r = 2
        xu = out.reshape(B, C, H // r, r, W // r, r).transpose(0, 1, 3, 5, 2, 4)
        xu = xu.reshape(B, C * r * r, H // r, W // r)
        out_down = _ref_conv2d(xu, params["ps_w"], params["ps_b"], 0)
        return out_down, out
    return out


# --------------------------------- main --------------------------------------

if __name__ == "__main__":
    key = jax.random.PRNGKey(0)
    kx, kp = jax.random.split(key)

    B, in_size, out_size, H, W = 2, 4, 8, 16, 16
    x = jax.random.normal(kx, (B, in_size, H, W), dtype=jnp.float32)
    params = init_params(kp, in_size, out_size, num_layers=3, downsample=True)

    fwd = jax.jit(functools.partial(unet_conv_block_forward, downsample=True))
    out_down, out = fwd(x, params)
    jax.block_until_ready((out_down, out))

    assert out.shape == (B, out_size, H, W)
    assert out_down.shape == (B, out_size, H // 2, W // 2)

    # Kernel pins bf16 MXU operands with f32 accumulation (plus an approx
    # softmax reciprocal); tolerance vs the f32-HIGHEST reference is set
    # accordingly (estimated worst-case error ~1e-2 at these scales).
    ref_down, ref_out = ref_forward(x, params, downsample=True)
    err = max(float(jnp.max(jnp.abs(out - ref_out))),
              float(jnp.max(jnp.abs(out_down - ref_down))))
    assert err < 5e-2, f"mismatch vs reference: {err}"

    print("KERNEL_OK")
</pallas_src>

<mosaic_0001>
module attributes {stable_mosaic.version = 11 : i64} {
  func.func @_sk_rdb_kernel(%arg0: i32, %arg1: memref<1x16x256xf32, #tpu.memory_space<vmem>>, %arg2: memref<2x256xf32, #tpu.memory_space<vmem>>, %arg3: memref<8x16xbf16, #tpu.memory_space<vmem>>, %arg4: memref<8x1xf32, #tpu.memory_space<vmem>>, %arg5: memref<3x16x144xbf16, #tpu.memory_space<vmem>>, %arg6: memref<3x16x1xf32, #tpu.memory_space<vmem>>, %arg7: memref<3x4x16xbf16, #tpu.memory_space<vmem>>, %arg8: memref<3x1x1xf32, #tpu.memory_space<vmem>>, %arg9: memref<3x32x4xbf16, #tpu.memory_space<vmem>>, %arg10: memref<8x16xbf16, #tpu.memory_space<vmem>>, %arg11: memref<8x1xf32, #tpu.memory_space<vmem>>, %arg12: memref<1x8x256xf32, #tpu.memory_space<vmem>>, %arg13: memref<16x290xf32, #tpu.memory_space<vmem>>, %arg14: memref<144x256xbf16, #tpu.memory_space<vmem>>) attributes {dimension_semantics = [#tpu.dimension_semantics<parallel>], iteration_bounds = array<i64: 2>, scalar_prefetch = 0 : i64, scratch_operands = 2 : i64, tpu.core_type = #tpu.core_type<tc>, window_params = [{transform_indices = @transform_0, window_bounds = array<i64: 1, 16, 256>}, {pipeline_mode = #tpu.pipeline_mode<synchronous>, transform_indices = @transform_1, window_bounds = array<i64: 2, 256>}, {pipeline_mode = #tpu.pipeline_mode<synchronous>, transform_indices = @transform_2, window_bounds = array<i64: 8, 16>}, {pipeline_mode = #tpu.pipeline_mode<synchronous>, transform_indices = @transform_3, window_bounds = array<i64: 8, 1>}, {pipeline_mode = #tpu.pipeline_mode<synchronous>, transform_indices = @transform_4, window_bounds = array<i64: 3, 16, 144>}, {pipeline_mode = #tpu.pipeline_mode<synchronous>, transform_indices = @transform_5, window_bounds = array<i64: 3, 16, 1>}, {pipeline_mode = #tpu.pipeline_mode<synchronous>, transform_indices = @transform_6, window_bounds = array<i64: 3, 4, 16>}, {pipeline_mode = #tpu.pipeline_mode<synchronous>, transform_indices = @transform_7, window_bounds = array<i64: 3, 1, 1>}, {pipeline_mode = #tpu.pipeline_mode<synchronous>, transform_indices = @transform_8, window_bounds = array<i64: 3, 32, 4>}, {pipeline_mode = #tpu.pipeline_mode<synchronous>, transform_indices = @transform_9, window_bounds = array<i64: 8, 16>}, {pipeline_mode = #tpu.pipeline_mode<synchronous>, transform_indices = @transform_10, window_bounds = array<i64: 8, 1>}, {transform_indices = @transform_11, window_bounds = array<i64: 1, 8, 256>}]} {
    %c0 = arith.constant 0 : index
    %c0_0 = arith.constant 0 : index
    %c0_1 = arith.constant 0 : index
    %0 = vector.load %arg1[%c0, %c0_0, %c0_1] : memref<1x16x256xf32, #tpu.memory_space<vmem>>, vector<1x16x256xf32>
    %1 = vector.shape_cast %0 : vector<1x16x256xf32> to vector<16x256xf32>
    %c0_2 = arith.constant 0 : index
    %c0_3 = arith.constant 0 : index
    %2 = vector.load %arg3[%c0_2, %c0_3] : memref<8x16xbf16, #tpu.memory_space<vmem>>, vector<8x16xbf16>
    %3 = arith.truncf %1 : vector<16x256xf32> to vector<16x256xbf16>
    %cst = arith.constant dense<0.000000e+00> : vector<8x256xf32>
    %4 = tpu.matmul %2, %3, %cst {dimension_numbers = #tpu.dot_dimension_numbers<[1], [0], [0], [1], [0, 0, 1, 1], [], []>} : vector<8x16xbf16>, vector<16x256xbf16>, vector<8x256xf32> -> vector<8x256xf32>
    %c0_4 = arith.constant 0 : index
    %c0_5 = arith.constant 0 : index
    %5 = vector.load %arg4[%c0_4, %c0_5] : memref<8x1xf32, #tpu.memory_space<vmem>>, vector<8x1xf32>
    %6 = vector.broadcast %5 : vector<8x1xf32> to vector<8x256xf32>
    %7 = arith.addf %4, %6 : vector<8x256xf32>
    %c0_6 = arith.constant 0 : index
    %c0_7 = arith.constant 0 : index
    %8 = vector.load %arg2[%c0_6, %c0_7] : memref<2x256xf32, #tpu.memory_space<vmem>>, vector<1x256xf32>
    %c1 = arith.constant 1 : index
    %c0_8 = arith.constant 0 : index
    %9 = vector.load %arg2[%c1, %c0_8] : memref<2x256xf32, #tpu.memory_space<vmem>>, vector<1x256xf32>
    %cst_9 = arith.constant 0.000000e+00 : f32
    %10 = vector.broadcast %cst_9 : f32 to vector<16x17xf32>
    %c0_10 = arith.constant 0 : index
    %c0_11 = arith.constant 0 : index
    %11 = vector.load %arg13[%c0_10, %c0_11] : memref<16x290xf32, #tpu.memory_space<vmem>>, vector<16x17xf32>
    tpu.vector_store %arg13[%c0_10, %c0_11], %10 {strides = array<i32>} : memref<16x290xf32, #tpu.memory_space<vmem>>, vector<16x17xf32>,
    %c0_12 = arith.constant 0 : index
    %c273 = arith.constant 273 : index
    %12 = vector.load %arg13[%c0_12, %c273] : memref<16x290xf32, #tpu.memory_space<vmem>>, vector<16x17xf32>
    tpu.vector_store %arg13[%c0_12, %c273], %10 {strides = array<i32>} : memref<16x290xf32, #tpu.memory_space<vmem>>, vector<16x17xf32>,
    %c0_13 = arith.constant 0 : index
    %c0_14 = arith.constant 0 : index
    %c0_15 = arith.constant 0 : index
    %13 = vector.load %arg5[%c0_13, %c0_14, %c0_15] : memref<3x16x144xbf16, #tpu.memory_space<vmem>>, vector<1x16x144xbf16>
    %14 = vector.shape_cast %13 : vector<1x16x144xbf16> to vector<16x144xbf16>
    %c0_16 = arith.constant 0 : index
    %c0_17 = arith.constant 0 : index
    %c0_18 = arith.constant 0 : index
    %15 = vector.load %arg6[%c0_16, %c0_17, %c0_18] : memref<3x16x1xf32, #tpu.memory_space<vmem>>, vector<1x16x1xf32>
    %16 = vector.shape_cast %15 : vector<1x16x1xf32> to vector<16x1xf32>
    %c0_19 = arith.constant 0 : index
    %c17 = arith.constant 17 : index
    %17 = vector.load %arg13[%c0_19, %c17] : memref<16x290xf32, #tpu.memory_space<vmem>>, vector<16x256xf32>
    tpu.vector_store %arg13[%c0_19, %c17], %1 {strides = array<i32>} : memref<16x290xf32, #tpu.memory_space<vmem>>, vector<16x256xf32>,
    %c0_20 = arith.constant 0 : index
    %c0_21 = arith.constant 0 : index
    %18 = vector.load %arg13[%c0_20, %c0_21] : memref<16x290xf32, #tpu.memory_space<vmem>>, vector<16x256xf32>
    %19 = vector.broadcast %8 : vector<1x256xf32> to vector<16x256xf32>
    %20 = arith.mulf %18, %19 : vector<16x256xf32>
    %21 = arith.truncf %20 : vector<16x256xf32> to vector<16x256xbf16>
    %c0_22 = arith.constant 0 : index
    %c0_23 = arith.constant 0 : index
    %22 = vector.load %arg14[%c0_22, %c0_23] : memref<144x256xbf16, #tpu.memory_space<vmem>>, vector<16x256xbf16>
    tpu.vector_store %arg14[%c0_22, %c0_23], %21 {strides = array<i32>} : memref<144x256xbf16, #tpu.memory_space<vmem>>, vector<16x256xbf16>,
    %c0_24 = arith.constant 0 : index
    %c1_25 = arith.constant 1 : index
    %23 = vector.load %arg13[%c0_24, %c1_25] : memref<16x290xf32, #tpu.memory_space<vmem>>, vector<16x256xf32>
    %24 = arith.truncf %23 : vector<16x256xf32> to vector<16x256xbf16>
    %c16 = arith.constant 16 : index
    %c0_26 = arith.constant 0 : index
    %25 = vector.load %arg14[%c16, %c0_26] : memref<144x256xbf16, #tpu.memory_space<vmem>>, vector<16x256xbf16>
    tpu.vector_store %arg14[%c16, %c0_26], %24 {strides = array<i32>} : memref<144x256xbf16, #tpu.memory_space<vmem>>, vector<16x256xbf16>,
    %c0_27 = arith.constant 0 : index
    %c2 = arith.constant 2 : index
    %26 = vector.load %arg13[%c0_27, %c2] : memref<16x290xf32, #tpu.memory_space<vmem>>, vector<16x256xf32>
    %27 = vector.broadcast %9 : vector<1x256xf32> to vector<16x256xf32>
    %28 = arith.mulf %26, %27 : vector<16x256xf32>
    %29 = arith.truncf %28 : vector<16x256xf32> to vector<16x256xbf16>
    %c32 = arith.constant 32 : index
    %c0_28 = arith.constant 0 : index
    %30 = vector.load %arg14[%c32, %c0_28] : memref<144x256xbf16, #tpu.memory_space<vmem>>, vector<16x256xbf16>
    tpu.vector_store %arg14[%c32, %c0_28], %29 {strides = array<i32>} : memref<144x256xbf16, #tpu.memory_space<vmem>>, vector<16x256xbf16>,
    %c0_29 = arith.constant 0 : index
    %c16_30 = arith.constant 16 : index
    %31 = vector.load %arg13[%c0_29, %c16_30] : memref<16x290xf32, #tpu.memory_space<vmem>>, vector<16x256xf32>
    %32 = vector.broadcast %8 : vector<1x256xf32> to vector<16x256xf32>
    %33 = arith.mulf %31, %32 : vector<16x256xf32>
    %34 = arith.truncf %33 : vector<16x256xf32> to vector<16x256xbf16>
    %c48 = arith.constant 48 : index
    %c0_31 = arith.constant 0 : index
    %35 = vector.load %arg14[%c48, %c0_31] : memref<144x256xbf16, #tpu.memory_space<vmem>>, vector<16x256xbf16>
    tpu.vector_store %arg14[%c48, %c0_31], %34 {strides = array<i32>} : memref<144x256xbf16, #tpu.memory_space<vmem>>, vector<16x256xbf16>,
    %c0_32 = arith.constant 0 : index
    %c17_33 = arith.constant 17 : index
    %36 = vector.load %arg13[%c0_32, %c17_33] : memref<16x290xf32, #tpu.memory_space<vmem>>, vector<16x256xf32>
    %37 = arith.truncf %36 : vector<16x256xf32> to vector<16x256xbf16>
    %c64 = arith.constant 64 : index
    %c0_34 = arith.constant 0 : index
    %38 = vector.load %arg14[%c64, %c0_34] : memref<144x256xbf16, #tpu.memory_space<vmem>>, vector<16x256xbf16>
    tpu.vector_store %arg14[%c64, %c0_34], %37 {strides = array<i32>} : memref<144x256xbf16, #tpu.memory_space<vmem>>, vector<16x256xbf16>,
    %c0_35 = arith.constant 0 : index
    %c18 = arith.constant 18 : index
    %39 = vector.load %arg13[%c0_35, %c18] : memref<16x290xf32, #tpu.memory_space<vmem>>, vector<16x256xf32>
    %40 = vector.broadcast %9 : vector<1x256xf32> to vector<16x256xf32>
    %41 = arith.mulf %39, %40 : vector<16x256xf32>
    %42 = arith.truncf %41 : vector<16x256xf32> to vector<16x256xbf16>
    %c80 = arith.constant 80 : index
    %c0_36 = arith.constant 0 : index
    %43 = vector.load %arg14[%c80, %c0_36] : memref<144x256xbf16, #tpu.memory_space<vmem>>, vector<16x256xbf16>
    tpu.vector_store %arg14[%c80, %c0_36], %42 {strides = array<i32>} : memref<144x256xbf16, #tpu.memory_space<vmem>>, vector<16x256xbf16>,
    %c0_37 = arith.constant 0 : index
    %c32_38 = arith.constant 32 : index
    %44 = vector.load %arg13[%c0_37, %c32_38] : memref<16x290xf32, #tpu.memory_space<vmem>>, vector<16x256xf32>
    %45 = vector.broadcast %8 : vector<1x256xf32> to vector<16x256xf32>
    %46 = arith.mulf %44, %45 : vector<16x256xf32>
    %47 = arith.truncf %46 : vector<16x256xf32> to vector<16x256xbf16>
    %c96 = arith.constant 96 : index
    %c0_39 = arith.constant 0 : index
    %48 = vector.load %arg14[%c96, %c0_39] : memref<144x256xbf16, #tpu.memory_space<vmem>>, vector<16x256xbf16>
    tpu.vector_store %arg14[%c96, %c0_39], %47 {strides = array<i32>} : memref<144x256xbf16, #tpu.memory_space<vmem>>, vector<16x256xbf16>,
    %c0_40 = arith.constant 0 : index
    %c33 = arith.constant 33 : index
    %49 = vector.load %arg13[%c0_40, %c33] : memref<16x290xf32, #tpu.memory_space<vmem>>, vector<16x256xf32>
    %50 = arith.truncf %49 : vector<16x256xf32> to vector<16x256xbf16>
    %c112 = arith.constant 112 : index
    %c0_41 = arith.constant 0 : index
    %51 = vector.load %arg14[%c112, %c0_41] : memref<144x256xbf16, #tpu.memory_space<vmem>>, vector<16x256xbf16>
    tpu.vector_store %arg14[%c112, %c0_41], %50 {strides = array<i32>} : memref<144x256xbf16, #tpu.memory_space<vmem>>, vector<16x256xbf16>,
    %c0_42 = arith.constant 0 : index
    %c34 = arith.constant 34 : index
    %52 = vector.load %arg13[%c0_42, %c34] : memref<16x290xf32, #tpu.memory_space<vmem>>, vector<16x256xf32>
    %53 = vector.broadcast %9 : vector<1x256xf32> to vector<16x256xf32>
    %54 = arith.mulf %52, %53 : vector<16x256xf32>
    %55 = arith.truncf %54 : vector<16x256xf32> to vector<16x256xbf16>
    %c128 = arith.constant 128 : index
    %c0_43 = arith.constant 0 : index
    %56 = vector.load %arg14[%c128, %c0_43] : memref<144x256xbf16, #tpu.memory_space<vmem>>, vector<16x256xbf16>
    tpu.vector_store %arg14[%c128, %c0_43], %55 {strides = array<i32>} : memref<144x256xbf16, #tpu.memory_space<vmem>>, vector<16x256xbf16>,
    %c0_44 = arith.constant 0 : index
    %c0_45 = arith.constant 0 : index
    %57 = vector.load %arg14[%c0_44, %c0_45] : memref<144x256xbf16, #tpu.memory_space<vmem>>, vector<144x256xbf16>
    %cst_46 = arith.constant dense<0.000000e+00> : vector<16x256xf32>
    %58 = tpu.matmul %14, %57, %cst_46 {dimension_numbers = #tpu.dot_dimension_numbers<[1], [0], [0], [1], [0, 0, 1, 1], [], []>} : vector<16x144xbf16>, vector<144x256xbf16>, vector<16x256xf32> -> vector<16x256xf32>
    %59 = vector.broadcast %16 : vector<16x1xf32> to vector<16x256xf32>
    %60 = arith.addf %58, %59 : vector<16x256xf32>
    %cst_47 = arith.constant 0.000000e+00 : f32
    %61 = vector.broadcast %cst_47 : f32 to vector<16x256xf32>
    %62 = arith.maximumf %60, %61 : vector<16x256xf32>
    %63 = arith.addf %1, %62 : vector<16x256xf32>
    %cst_48 = arith.constant dense<0.000000e+00> : vector<16xf32>
    %64 = vector.multi_reduction <add>, %63, %cst_48 [1] : vector<16x256xf32> to vector<16xf32>
    %65 = vector.shape_cast %64 : vector<16xf32> to vector<16x1xf32>
    %cst_49 = arith.constant 3.906250e-03 : f32
    %66 = vector.broadcast %cst_49 : f32 to vector<16x1xf32>
    %67 = arith.mulf %65, %66 : vector<16x1xf32>
    %c0_50 = arith.constant 0 : index
    %c0_51 = arith.constant 0 : index
    %c0_52 = arith.constant 0 : index
    %68 = vector.load %arg7[%c0_50, %c0_51, %c0_52] : memref<3x4x16xbf16, #tpu.memory_space<vmem>>, vector<1x4x16xbf16>
    %69 = vector.shape_cast %68 : vector<1x4x16xbf16> to vector<4x16xbf16>
    %70 = arith.truncf %67 : vector<16x1xf32> to vector<16x1xbf16>
    %cst_53 = arith.constant dense<0.000000e+00> : vector<4x1xf32>
    %71 = tpu.matmul %69, %70, %cst_53 {dimension_numbers = #tpu.dot_dimension_numbers<[1], [0], [0], [1], [0, 0, 1, 1], [], []>} : vector<4x16xbf16>, vector<16x1xbf16>, vector<4x1xf32> -> vector<4x1xf32>
    %cst_54 = arith.constant 0.000000e+00 : f32
    %72 = vector.broadcast %cst_54 : f32 to vector<4x1xf32>
    %73 = arith.cmpf oge, %71, %72 : vector<4x1xf32>
    %c0_55 = arith.constant 0 : index
    %c0_56 = arith.constant 0 : index
    %c0_57 = arith.constant 0 : index
    %74 = vector.load %arg8[%c0_55, %c0_56, %c0_57] : memref<3x1x1xf32, #tpu.memory_space<vmem>>, vector<1x1x1xf32>
    %75 = vector.shape_cast %74 : vector<1x1x1xf32> to vector<1x1xf32>
    %76 = vector.broadcast %75 : vector<1x1xf32> to vector<4x1xf32>
    %77 = arith.mulf %76, %71 : vector<4x1xf32>
    %78 = arith.select %73, %71, %77 : vector<4x1xi1>, vector<4x1xf32>
    %c0_58 = arith.constant 0 : index
    %c0_59 = arith.constant 0 : index
    %c0_60 = arith.constant 0 : index
    %79 = vector.load %arg9[%c0_58, %c0_59, %c0_60] : memref<3x32x4xbf16, #tpu.memory_space<vmem>>, vector<1x32x4xbf16>
    %80 = vector.shape_cast %79 : vector<1x32x4xbf16> to vector<32x4xbf16>
    %81 = arith.truncf %78 : vector<4x1xf32> to vector<4x1xbf16>
    %cst_61 = arith.constant dense<0.000000e+00> : vector<32x1xf32>
    %82 = tpu.matmul %80, %81, %cst_61 {dimension_numbers = #tpu.dot_dimension_numbers<[1], [0], [0], [1], [0, 0, 1, 1], [], []>} : vector<32x4xbf16>, vector<4x1xbf16>, vector<32x1xf32> -> vector<32x1xf32>
    %83 = vector.extract_strided_slice %82 {offsets = [0, 0], sizes = [16, 1], strides = [1, 1]} : vector<32x1xf32> to vector<16x1xf32>
    %84 = vector.extract_strided_slice %82 {offsets = [16, 0], sizes = [16, 1], strides = [1, 1]} : vector<32x1xf32> to vector<16x1xf32>
    %85 = arith.maximumf %83, %84 : vector<16x1xf32>
    %86 = arith.subf %83, %85 : vector<16x1xf32>
    %87 = math.exp %86 : vector<16x1xf32>
    %88 = arith.subf %84, %85 : vector<16x1xf32>
    %89 = math.exp %88 : vector<16x1xf32>
    %90 = arith.addf %87, %89 : vector<16x1xf32>
    %91 = tpu.reciprocal %90 {approx = true} : vector<16x1xf32> -> vector<16x1xf32>
    %92 = arith.mulf %87, %91 : vector<16x1xf32>
    %93 = vector.broadcast %92 : vector<16x1xf32> to vector<16x256xf32>
    %94 = arith.mulf %1, %93 : vector<16x256xf32>
    %95 = arith.mulf %89, %91 : vector<16x1xf32>
    %96 = vector.broadcast %95 : vector<16x1xf32> to vector<16x256xf32>
    %97 = arith.mulf %62, %96 : vector<16x256xf32>
    %98 = arith.addf %94, %97 : vector<16x256xf32>
    %c1_62 = arith.constant 1 : index
    %c0_63 = arith.constant 0 : index
    %c0_64 = arith.constant 0 : index
    %99 = vector.load %arg5[%c1_62, %c0_63, %c0_64] : memref<3x16x144xbf16, #tpu.memory_space<vmem>>, vector<1x16x144xbf16>
    %100 = vector.shape_cast %99 : vector<1x16x144xbf16> to vector<16x144xbf16>
    %c1_65 = arith.constant 1 : index
    %c0_66 = arith.constant 0 : index
    %c0_67 = arith.constant 0 : index
    %101 = vector.load %arg6[%c1_65, %c0_66, %c0_67] : memref<3x16x1xf32, #tpu.memory_space<vmem>>, vector<1x16x1xf32>
    %102 = vector.shape_cast %101 : vector<1x16x1xf32> to vector<16x1xf32>
    %c0_68 = arith.constant 0 : index
    %c17_69 = arith.constant 17 : index
    %103 = vector.load %arg13[%c0_68, %c17_69] : memref<16x290xf32, #tpu.memory_space<vmem>>, vector<16x256xf32>
    tpu.vector_store %arg13[%c0_68, %c17_69], %98 {strides = array<i32>} : memref<16x290xf32, #tpu.memory_space<vmem>>, vector<16x256xf32>,
    %c0_70 = arith.constant 0 : index
    %c0_71 = arith.constant 0 : index
    %104 = vector.load %arg13[%c0_70, %c0_71] : memref<16x290xf32, #tpu.memory_space<vmem>>, vector<16x256xf32>
    %105 = vector.broadcast %8 : vector<1x256xf32> to vector<16x256xf32>
    %106 = arith.mulf %104, %105 : vector<16x256xf32>
    %107 = arith.truncf %106 : vector<16x256xf32> to vector<16x256xbf16>
    %c0_72 = arith.constant 0 : index
    %c0_73 = arith.constant 0 : index
    %108 = vector.load %arg14[%c0_72, %c0_73] : memref<144x256xbf16, #tpu.memory_space<vmem>>, vector<16x256xbf16>
    tpu.vector_store %arg14[%c0_72, %c0_73], %107 {strides = array<i32>} : memref<144x256xbf16, #tpu.memory_space<vmem>>, vector<16x256xbf16>,
    %c0_74 = arith.constant 0 : index
    %c1_75 = arith.constant 1 : index
    %109 = vector.load %arg13[%c0_74, %c1_75] : memref<16x290xf32, #tpu.memory_space<vmem>>, vector<16x256xf32>
    %110 = arith.truncf %109 : vector<16x256xf32> to vector<16x256xbf16>
    %c16_76 = arith.constant 16 : index
    %c0_77 = arith.constant 0 : index
    %111 = vector.load %arg14[%c16_76, %c0_77] : memref<144x256xbf16, #tpu.memory_space<vmem>>, vector<16x256xbf16>
    tpu.vector_store %arg14[%c16_76, %c0_77], %110 {strides = array<i32>} : memref<144x256xbf16, #tpu.memory_space<vmem>>, vector<16x256xbf16>,
    %c0_78 = arith.constant 0 : index
    %c2_79 = arith.constant 2 : index
    %112 = vector.load %arg13[%c0_78, %c2_79] : memref<16x290xf32, #tpu.memory_space<vmem>>, vector<16x256xf32>
    %113 = vector.broadcast %9 : vector<1x256xf32> to vector<16x256xf32>
    %114 = arith.mulf %112, %113 : vector<16x256xf32>
    %115 = arith.truncf %114 : vector<16x256xf32> to vector<16x256xbf16>
    %c32_80 = arith.constant 32 : index
    %c0_81 = arith.constant 0 : index
    %116 = vector.load %arg14[%c32_80, %c0_81] : memref<144x256xbf16, #tpu.memory_space<vmem>>, vector<16x256xbf16>
    tpu.vector_store %arg14[%c32_80, %c0_81], %115 {strides = array<i32>} : memref<144x256xbf16, #tpu.memory_space<vmem>>, vector<16x256xbf16>,
    %c0_82 = arith.constant 0 : index
    %c16_83 = arith.constant 16 : index
    %117 = vector.load %arg13[%c0_82, %c16_83] : memref<16x290xf32, #tpu.memory_space<vmem>>, vector<16x256xf32>
    %118 = vector.broadcast %8 : vector<1x256xf32> to vector<16x256xf32>
    %119 = arith.mulf %117, %118 : vector<16x256xf32>
    %120 = arith.truncf %119 : vector<16x256xf32> to vector<16x256xbf16>
    %c48_84 = arith.constant 48 : index
    %c0_85 = arith.constant 0 : index
    %121 = vector.load %arg14[%c48_84, %c0_85] : memref<144x256xbf16, #tpu.memory_space<vmem>>, vector<16x256xbf16>
    tpu.vector_store %arg14[%c48_84, %c0_85], %120 {strides = array<i32>} : memref<144x256xbf16, #tpu.memory_space<vmem>>, vector<16x256xbf16>,
    %c0_86 = arith.constant 0 : index
    %c17_87 = arith.constant 17 : index
    %122 = vector.load %arg13[%c0_86, %c17_87] : memref<16x290xf32, #tpu.memory_space<vmem>>, vector<16x256xf32>
    %123 = arith.truncf %122 : vector<16x256xf32> to vector<16x256xbf16>
    %c64_88 = arith.constant 64 : index
    %c0_89 = arith.constant 0 : index
    %124 = vector.load %arg14[%c64_88, %c0_89] : memref<144x256xbf16, #tpu.memory_space<vmem>>, vector<16x256xbf16>
    tpu.vector_store %arg14[%c64_88, %c0_89], %123 {strides = array<i32>} : memref<144x256xbf16, #tpu.memory_space<vmem>>, vector<16x256xbf16>,
    %c0_90 = arith.constant 0 : index
    %c18_91 = arith.constant 18 : index
    %125 = vector.load %arg13[%c0_90, %c18_91] : memref<16x290xf32, #tpu.memory_space<vmem>>, vector<16x256xf32>
    %126 = vector.broadcast %9 : vector<1x256xf32> to vector<16x256xf32>
    %127 = arith.mulf %125, %126 : vector<16x256xf32>
    %128 = arith.truncf %127 : vector<16x256xf32> to vector<16x256xbf16>
    %c80_92 = arith.constant 80 : index
    %c0_93 = arith.constant 0 : index
    %129 = vector.load %arg14[%c80_92, %c0_93] : memref<144x256xbf16, #tpu.memory_space<vmem>>, vector<16x256xbf16>
    tpu.vector_store %arg14[%c80_92, %c0_93], %128 {strides = array<i32>} : memref<144x256xbf16, #tpu.memory_space<vmem>>, vector<16x256xbf16>,
    %c0_94 = arith.constant 0 : index
    %c32_95 = arith.constant 32 : index
    %130 = vector.load %arg13[%c0_94, %c32_95] : memref<16x290xf32, #tpu.memory_space<vmem>>, vector<16x256xf32>
    %131 = vector.broadcast %8 : vector<1x256xf32> to vector<16x256xf32>
    %132 = arith.mulf %130, %131 : vector<16x256xf32>
    %133 = arith.truncf %132 : vector<16x256xf32> to vector<16x256xbf16>
    %c96_96 = arith.constant 96 : index
    %c0_97 = arith.constant 0 : index
    %134 = vector.load %arg14[%c96_96, %c0_97] : memref<144x256xbf16, #tpu.memory_space<vmem>>, vector<16x256xbf16>
    tpu.vector_store %arg14[%c96_96, %c0_97], %133 {strides = array<i32>} : memref<144x256xbf16, #tpu.memory_space<vmem>>, vector<16x256xbf16>,
    %c0_98 = arith.constant 0 : index
    %c33_99 = arith.constant 33 : index
    %135 = vector.load %arg13[%c0_98, %c33_99] : memref<16x290xf32, #tpu.memory_space<vmem>>, vector<16x256xf32>
    %136 = arith.truncf %135 : vector<16x256xf32> to vector<16x256xbf16>
    %c112_100 = arith.constant 112 : index
    %c0_101 = arith.constant 0 : index
    %137 = vector.load %arg14[%c112_100, %c0_101] : memref<144x256xbf16, #tpu.memory_space<vmem>>, vector<16x256xbf16>
    tpu.vector_store %arg14[%c112_100, %c0_101], %136 {strides = array<i32>} : memref<144x256xbf16, #tpu.memory_space<vmem>>, vector<16x256xbf16>,
    %c0_102 = arith.constant 0 : index
    %c34_103 = arith.constant 34 : index
    %138 = vector.load %arg13[%c0_102, %c34_103] : memref<16x290xf32, #tpu.memory_space<vmem>>, vector<16x256xf32>
    %139 = vector.broadcast %9 : vector<1x256xf32> to vector<16x256xf32>
    %140 = arith.mulf %138, %139 : vector<16x256xf32>
    %141 = arith.truncf %140 : vector<16x256xf32> to vector<16x256xbf16>
    %c128_104 = arith.constant 128 : index
    %c0_105 = arith.constant 0 : index
    %142 = vector.load %arg14[%c128_104, %c0_105] : memref<144x256xbf16, #tpu.memory_space<vmem>>, vector<16x256xbf16>
    tpu.vector_store %arg14[%c128_104, %c0_105], %141 {strides = array<i32>} : memref<144x256xbf16, #tpu.memory_space<vmem>>, vector<16x256xbf16>,
    %c0_106 = arith.constant 0 : index
    %c0_107 = arith.constant 0 : index
    %143 = vector.load %arg14[%c0_106, %c0_107] : memref<144x256xbf16, #tpu.memory_space<vmem>>, vector<144x256xbf16>
    %cst_108 = arith.constant dense<0.000000e+00> : vector<16x256xf32>
    %144 = tpu.matmul %100, %143, %cst_108 {dimension_numbers = #tpu.dot_dimension_numbers<[1], [0], [0], [1], [0, 0, 1, 1], [], []>} : vector<16x144xbf16>, vector<144x256xbf16>, vector<16x256xf32> -> vector<16x256xf32>
    %145 = vector.broadcast %102 : vector<16x1xf32> to vector<16x256xf32>
    %146 = arith.addf %144, %145 : vector<16x256xf32>
    %cst_109 = arith.constant 0.000000e+00 : f32
    %147 = vector.broadcast %cst_109 : f32 to vector<16x256xf32>
    %148 = arith.maximumf %146, %147 : vector<16x256xf32>
    %149 = arith.addf %98, %148 : vector<16x256xf32>
    %cst_110 = arith.constant dense<0.000000e+00> : vector<16xf32>
    %150 = vector.multi_reduction <add>, %149, %cst_110 [1] : vector<16x256xf32> to vector<16xf32>
    %151 = vector.shape_cast %150 : vector<16xf32> to vector<16x1xf32>
    %cst_111 = arith.constant 3.906250e-03 : f32
    %152 = vector.broadcast %cst_111 : f32 to vector<16x1xf32>
    %153 = arith.mulf %151, %152 : vector<16x1xf32>
    %c1_112 = arith.constant 1 : index
    %c0_113 = arith.constant 0 : index
    %c0_114 = arith.constant 0 : index
    %154 = vector.load %arg7[%c1_112, %c0_113, %c0_114] : memref<3x4x16xbf16, #tpu.memory_space<vmem>>, vector<1x4x16xbf16>
    %155 = vector.shape_cast %154 : vector<1x4x16xbf16> to vector<4x16xbf16>
    %156 = arith.truncf %153 : vector<16x1xf32> to vector<16x1xbf16>
    %cst_115 = arith.constant dense<0.000000e+00> : vector<4x1xf32>
    %157 = tpu.matmul %155, %156, %cst_115 {dimension_numbers = #tpu.dot_dimension_numbers<[1], [0], [0], [1], [0, 0, 1, 1], [], []>} : vector<4x16xbf16>, vector<16x1xbf16>, vector<4x1xf32> -> vector<4x1xf32>
    %cst_116 = arith.constant 0.000000e+00 : f32
    %158 = vector.broadcast %cst_116 : f32 to vector<4x1xf32>
    %159 = arith.cmpf oge, %157, %158 : vector<4x1xf32>
    %c1_117 = arith.constant 1 : index
    %c0_118 = arith.constant 0 : index
    %c0_119 = arith.constant 0 : index
    %160 = vector.load %arg8[%c1_117, %c0_118, %c0_119] : memref<3x1x1xf32, #tpu.memory_space<vmem>>, vector<1x1x1xf32>
    %161 = vector.shape_cast %160 : vector<1x1x1xf32> to vector<1x1xf32>
    %162 = vector.broadcast %161 : vector<1x1xf32> to vector<4x1xf32>
    %163 = arith.mulf %162, %157 : vector<4x1xf32>
    %164 = arith.select %159, %157, %163 : vector<4x1xi1>, vector<4x1xf32>
    %c1_120 = arith.constant 1 : index
    %c0_121 = arith.constant 0 : index
    %c0_122 = arith.constant 0 : index
    %165 = vector.load %arg9[%c1_120, %c0_121, %c0_122] : memref<3x32x4xbf16, #tpu.memory_space<vmem>>, vector<1x32x4xbf16>
    %166 = vector.shape_cast %165 : vector<1x32x4xbf16> to vector<32x4xbf16>
    %167 = arith.truncf %164 : vector<4x1xf32> to vector<4x1xbf16>
    %cst_123 = arith.constant dense<0.000000e+00> : vector<32x1xf32>
    %168 = tpu.matmul %166, %167, %cst_123 {dimension_numbers = #tpu.dot_dimension_numbers<[1], [0], [0], [1], [0, 0, 1, 1], [], []>} : vector<32x4xbf16>, vector<4x1xbf16>, vector<32x1xf32> -> vector<32x1xf32>
    %169 = vector.extract_strided_slice %168 {offsets = [0, 0], sizes = [16, 1], strides = [1, 1]} : vector<32x1xf32> to vector<16x1xf32>
    %170 = vector.extract_strided_slice %168 {offsets = [16, 0], sizes = [16, 1], strides = [1, 1]} : vector<32x1xf32> to vector<16x1xf32>
    %171 = arith.maximumf %169, %170 : vector<16x1xf32>
    %172 = arith.subf %169, %171 : vector<16x1xf32>
    %173 = math.exp %172 : vector<16x1xf32>
    %174 = arith.subf %170, %171 : vector<16x1xf32>
    %175 = math.exp %174 : vector<16x1xf32>
    %176 = arith.addf %173, %175 : vector<16x1xf32>
    %177 = tpu.reciprocal %176 {approx = true} : vector<16x1xf32> -> vector<16x1xf32>
    %178 = arith.mulf %173, %177 : vector<16x1xf32>
    %179 = vector.broadcast %178 : vector<16x1xf32> to vector<16x256xf32>
    %180 = arith.mulf %98, %179 : vector<16x256xf32>
    %181 = arith.mulf %175, %177 : vector<16x1xf32>
    %182 = vector.broadcast %181 : vector<16x1xf32> to vector<16x256xf32>
    %183 = arith.mulf %148, %182 : vector<16x256xf32>
    %184 = arith.addf %180, %183 : vector<16x256xf32>
    %c2_124 = arith.constant 2 : index
    %c0_125 = arith.constant 0 : index
    %c0_126 = arith.constant 0 : index
    %185 = vector.load %arg5[%c2_124, %c0_125, %c0_126] : memref<3x16x144xbf16, #tpu.memory_space<vmem>>, vector<1x16x144xbf16>
    %186 = vector.shape_cast %185 : vector<1x16x144xbf16> to vector<16x144xbf16>
    %c2_127 = arith.constant 2 : index
    %c0_128 = arith.constant 0 : index
    %c0_129 = arith.constant 0 : index
    %187 = vector.load %arg6[%c2_127, %c0_128, %c0_129] : memref<3x16x1xf32, #tpu.memory_space<vmem>>, vector<1x16x1xf32>
    %188 = vector.shape_cast %187 : vector<1x16x1xf32> to vector<16x1xf32>
    %c0_130 = arith.constant 0 : index
    %c17_131 = arith.constant 17 : index
    %189 = vector.load %arg13[%c0_130, %c17_131] : memref<16x290xf32, #tpu.memory_space<vmem>>, vector<16x256xf32>
    tpu.vector_store %arg13[%c0_130, %c17_131], %184 {strides = array<i32>} : memref<16x290xf32, #tpu.memory_space<vmem>>, vector<16x256xf32>,
    %c0_132 = arith.constant 0 : index
    %c0_133 = arith.constant 0 : index
    %190 = vector.load %arg13[%c0_132, %c0_133] : memref<16x290xf32, #tpu.memory_space<vmem>>, vector<16x256xf32>
    %191 = vector.broadcast %8 : vector<1x256xf32> to vector<16x256xf32>
    %192 = arith.mulf %190, %191 : vector<16x256xf32>
    %193 = arith.truncf %192 : vector<16x256xf32> to vector<16x256xbf16>
    %c0_134 = arith.constant 0 : index
    %c0_135 = arith.constant 0 : index
    %194 = vector.load %arg14[%c0_134, %c0_135] : memref<144x256xbf16, #tpu.memory_space<vmem>>, vector<16x256xbf16>
    tpu.vector_store %arg14[%c0_134, %c0_135], %193 {strides = array<i32>} : memref<144x256xbf16, #tpu.memory_space<vmem>>, vector<16x256xbf16>,
    %c0_136 = arith.constant 0 : index
    %c1_137 = arith.constant 1 : index
    %195 = vector.load %arg13[%c0_136, %c1_137] : memref<16x290xf32, #tpu.memory_space<vmem>>, vector<16x256xf32>
    %196 = arith.truncf %195 : vector<16x256xf32> to vector<16x256xbf16>
    %c16_138 = arith.constant 16 : index
    %c0_139 = arith.constant 0 : index
    %197 = vector.load %arg14[%c16_138, %c0_139] : memref<144x256xbf16, #tpu.memory_space<vmem>>, vector<16x256xbf16>
    tpu.vector_store %arg14[%c16_138, %c0_139], %196 {strides = array<i32>} : memref<144x256xbf16, #tpu.memory_space<vmem>>, vector<16x256xbf16>,
    %c0_140 = arith.constant 0 : index
    %c2_141 = arith.constant 2 : index
    %198 = vector.load %arg13[%c0_140, %c2_141] : memref<16x290xf32, #tpu.memory_space<vmem>>, vector<16x256xf32>
    %199 = vector.broadcast %9 : vector<1x256xf32> to vector<16x256xf32>
    %200 = arith.mulf %198, %199 : vector<16x256xf32>
    %201 = arith.truncf %200 : vector<16x256xf32> to vector<16x256xbf16>
    %c32_142 = arith.constant 32 : index
    %c0_143 = arith.constant 0 : index
    %202 = vector.load %arg14[%c32_142, %c0_143] : memref<144x256xbf16, #tpu.memory_space<vmem>>, vector<16x256xbf16>
    tpu.vector_store %arg14[%c32_142, %c0_143], %201 {strides = array<i32>} : memref<144x256xbf16, #tpu.memory_space<vmem>>, vector<16x256xbf16>,
    %c0_144 = arith.constant 0 : index
    %c16_145 = arith.constant 16 : index
    %203 = vector.load %arg13[%c0_144, %c16_145] : memref<16x290xf32, #tpu.memory_space<vmem>>, vector<16x256xf32>
    %204 = vector.broadcast %8 : vector<1x256xf32> to vector<16x256xf32>
    %205 = arith.mulf %203, %204 : vector<16x256xf32>
    %206 = arith.truncf %205 : vector<16x256xf32> to vector<16x256xbf16>
    %c48_146 = arith.constant 48 : index
    %c0_147 = arith.constant 0 : index
    %207 = vector.load %arg14[%c48_146, %c0_147] : memref<144x256xbf16, #tpu.memory_space<vmem>>, vector<16x256xbf16>
    tpu.vector_store %arg14[%c48_146, %c0_147], %206 {strides = array<i32>} : memref<144x256xbf16, #tpu.memory_space<vmem>>, vector<16x256xbf16>,
    %c0_148 = arith.constant 0 : index
    %c17_149 = arith.constant 17 : index
    %208 = vector.load %arg13[%c0_148, %c17_149] : memref<16x290xf32, #tpu.memory_space<vmem>>, vector<16x256xf32>
    %209 = arith.truncf %208 : vector<16x256xf32> to vector<16x256xbf16>
    %c64_150 = arith.constant 64 : index
    %c0_151 = arith.constant 0 : index
    %210 = vector.load %arg14[%c64_150, %c0_151] : memref<144x256xbf16, #tpu.memory_space<vmem>>, vector<16x256xbf16>
    tpu.vector_store %arg14[%c64_150, %c0_151], %209 {strides = array<i32>} : memref<144x256xbf16, #tpu.memory_space<vmem>>, vector<16x256xbf16>,
    %c0_152 = arith.constant 0 : index
    %c18_153 = arith.constant 18 : index
    %211 = vector.load %arg13[%c0_152, %c18_153] : memref<16x290xf32, #tpu.memory_space<vmem>>, vector<16x256xf32>
    %212 = vector.broadcast %9 : vector<1x256xf32> to vector<16x256xf32>
    %213 = arith.mulf %211, %212 : vector<16x256xf32>
    %214 = arith.truncf %213 : vector<16x256xf32> to vector<16x256xbf16>
    %c80_154 = arith.constant 80 : index
    %c0_155 = arith.constant 0 : index
    %215 = vector.load %arg14[%c80_154, %c0_155] : memref<144x256xbf16, #tpu.memory_space<vmem>>, vector<16x256xbf16>
    tpu.vector_store %arg14[%c80_154, %c0_155], %214 {strides = array<i32>} : memref<144x256xbf16, #tpu.memory_space<vmem>>, vector<16x256xbf16>,
    %c0_156 = arith.constant 0 : index
    %c32_157 = arith.constant 32 : index
    %216 = vector.load %arg13[%c0_156, %c32_157] : memref<16x290xf32, #tpu.memory_space<vmem>>, vector<16x256xf32>
    %217 = vector.broadcast %8 : vector<1x256xf32> to vector<16x256xf32>
    %218 = arith.mulf %216, %217 : vector<16x256xf32>
    %219 = arith.truncf %218 : vector<16x256xf32> to vector<16x256xbf16>
    %c96_158 = arith.constant 96 : index
    %c0_159 = arith.constant 0 : index
    %220 = vector.load %arg14[%c96_158, %c0_159] : memref<144x256xbf16, #tpu.memory_space<vmem>>, vector<16x256xbf16>
    tpu.vector_store %arg14[%c96_158, %c0_159], %219 {strides = array<i32>} : memref<144x256xbf16, #tpu.memory_space<vmem>>, vector<16x256xbf16>,
    %c0_160 = arith.constant 0 : index
    %c33_161 = arith.constant 33 : index
    %221 = vector.load %arg13[%c0_160, %c33_161] : memref<16x290xf32, #tpu.memory_space<vmem>>, vector<16x256xf32>
    %222 = arith.truncf %221 : vector<16x256xf32> to vector<16x256xbf16>
    %c112_162 = arith.constant 112 : index
    %c0_163 = arith.constant 0 : index
    %223 = vector.load %arg14[%c112_162, %c0_163] : memref<144x256xbf16, #tpu.memory_space<vmem>>, vector<16x256xbf16>
    tpu.vector_store %arg14[%c112_162, %c0_163], %222 {strides = array<i32>} : memref<144x256xbf16, #tpu.memory_space<vmem>>, vector<16x256xbf16>,
    %c0_164 = arith.constant 0 : index
    %c34_165 = arith.constant 34 : index
    %224 = vector.load %arg13[%c0_164, %c34_165] : memref<16x290xf32, #tpu.memory_space<vmem>>, vector<16x256xf32>
    %225 = vector.broadcast %9 : vector<1x256xf32> to vector<16x256xf32>
    %226 = arith.mulf %224, %225 : vector<16x256xf32>
    %227 = arith.truncf %226 : vector<16x256xf32> to vector<16x256xbf16>
    %c128_166 = arith.constant 128 : index
    %c0_167 = arith.constant 0 : index
    %228 = vector.load %arg14[%c128_166, %c0_167] : memref<144x256xbf16, #tpu.memory_space<vmem>>, vector<16x256xbf16>
    tpu.vector_store %arg14[%c128_166, %c0_167], %227 {strides = array<i32>} : memref<144x256xbf16, #tpu.memory_space<vmem>>, vector<16x256xbf16>,
    %c0_168 = arith.constant 0 : index
    %c0_169 = arith.constant 0 : index
    %229 = vector.load %arg14[%c0_168, %c0_169] : memref<144x256xbf16, #tpu.memory_space<vmem>>, vector<144x256xbf16>
    %cst_170 = arith.constant dense<0.000000e+00> : vector<16x256xf32>
    %230 = tpu.matmul %186, %229, %cst_170 {dimension_numbers = #tpu.dot_dimension_numbers<[1], [0], [0], [1], [0, 0, 1, 1], [], []>} : vector<16x144xbf16>, vector<144x256xbf16>, vector<16x256xf32> -> vector<16x256xf32>
    %231 = vector.broadcast %188 : vector<16x1xf32> to vector<16x256xf32>
    %232 = arith.addf %230, %231 : vector<16x256xf32>
    %cst_171 = arith.constant 0.000000e+00 : f32
    %233 = vector.broadcast %cst_171 : f32 to vector<16x256xf32>
    %234 = arith.maximumf %232, %233 : vector<16x256xf32>
    %235 = arith.addf %184, %234 : vector<16x256xf32>
    %cst_172 = arith.constant dense<0.000000e+00> : vector<16xf32>
    %236 = vector.multi_reduction <add>, %235, %cst_172 [1] : vector<16x256xf32> to vector<16xf32>
    %237 = vector.shape_cast %236 : vector<16xf32> to vector<16x1xf32>
    %cst_173 = arith.constant 3.906250e-03 : f32
    %238 = vector.broadcast %cst_173 : f32 to vector<16x1xf32>
    %239 = arith.mulf %237, %238 : vector<16x1xf32>
    %c2_174 = arith.constant 2 : index
    %c0_175 = arith.constant 0 : index
    %c0_176 = arith.constant 0 : index
    %240 = vector.load %arg7[%c2_174, %c0_175, %c0_176] : memref<3x4x16xbf16, #tpu.memory_space<vmem>>, vector<1x4x16xbf16>
    %241 = vector.shape_cast %240 : vector<1x4x16xbf16> to vector<4x16xbf16>
    %242 = arith.truncf %239 : vector<16x1xf32> to vector<16x1xbf16>
    %cst_177 = arith.constant dense<0.000000e+00> : vector<4x1xf32>
    %243 = tpu.matmul %241, %242, %cst_177 {dimension_numbers = #tpu.dot_dimension_numbers<[1], [0], [0], [1], [0, 0, 1, 1], [], []>} : vector<4x16xbf16>, vector<16x1xbf16>, vector<4x1xf32> -> vector<4x1xf32>
    %cst_178 = arith.constant 0.000000e+00 : f32
    %244 = vector.broadcast %cst_178 : f32 to vector<4x1xf32>
    %245 = arith.cmpf oge, %243, %244 : vector<4x1xf32>
    %c2_179 = arith.constant 2 : index
    %c0_180 = arith.constant 0 : index
    %c0_181 = arith.constant 0 : index
    %246 = vector.load %arg8[%c2_179, %c0_180, %c0_181] : memref<3x1x1xf32, #tpu.memory_space<vmem>>, vector<1x1x1xf32>
    %247 = vector.shape_cast %246 : vector<1x1x1xf32> to vector<1x1xf32>
    %248 = vector.broadcast %247 : vector<1x1xf32> to vector<4x1xf32>
    %249 = arith.mulf %248, %243 : vector<4x1xf32>
    %250 = arith.select %245, %243, %249 : vector<4x1xi1>, vector<4x1xf32>
    %c2_182 = arith.constant 2 : index
    %c0_183 = arith.constant 0 : index
    %c0_184 = arith.constant 0 : index
    %251 = vector.load %arg9[%c2_182, %c0_183, %c0_184] : memref<3x32x4xbf16, #tpu.memory_space<vmem>>, vector<1x32x4xbf16>
    %252 = vector.shape_cast %251 : vector<1x32x4xbf16> to vector<32x4xbf16>
    %253 = arith.truncf %250 : vector<4x1xf32> to vector<4x1xbf16>
    %cst_185 = arith.constant dense<0.000000e+00> : vector<32x1xf32>
    %254 = tpu.matmul %252, %253, %cst_185 {dimension_numbers = #tpu.dot_dimension_numbers<[1], [0], [0], [1], [0, 0, 1, 1], [], []>} : vector<32x4xbf16>, vector<4x1xbf16>, vector<32x1xf32> -> vector<32x1xf32>
    %255 = vector.extract_strided_slice %254 {offsets = [0, 0], sizes = [16, 1], strides = [1, 1]} : vector<32x1xf32> to vector<16x1xf32>
    %256 = vector.extract_strided_slice %254 {offsets = [16, 0], sizes = [16, 1], strides = [1, 1]} : vector<32x1xf32> to vector<16x1xf32>
    %257 = arith.maximumf %255, %256 : vector<16x1xf32>
    %258 = arith.subf %255, %257 : vector<16x1xf32>
    %259 = math.exp %258 : vector<16x1xf32>
    %260 = arith.subf %256, %257 : vector<16x1xf32>
    %261 = math.exp %260 : vector<16x1xf32>
    %262 = arith.addf %259, %261 : vector<16x1xf32>
    %263 = tpu.reciprocal %262 {approx = true} : vector<16x1xf32> -> vector<16x1xf32>
    %264 = arith.mulf %259, %263 : vector<16x1xf32>
    %265 = vector.broadcast %264 : vector<16x1xf32> to vector<16x256xf32>
    %266 = arith.mulf %184, %265 : vector<16x256xf32>
    %267 = arith.mulf %261, %263 : vector<16x1xf32>
    %268 = vector.broadcast %267 : vector<16x1xf32> to vector<16x256xf32>
    %269 = arith.mulf %234, %268 : vector<16x256xf32>
    %270 = arith.addf %266, %269 : vector<16x256xf32>
    %c0_186 = arith.constant 0 : index
    %c0_187 = arith.constant 0 : index
    %271 = vector.load %arg10[%c0_186, %c0_187] : memref<8x16xbf16, #tpu.memory_space<vmem>>, vector<8x16xbf16>
    %272 = arith.truncf %270 : vector<16x256xf32> to vector<16x256xbf16>
    %cst_188 = arith.constant dense<0.000000e+00> : vector<8x256xf32>
    %273 = tpu.matmul %271, %272, %cst_188 {dimension_numbers = #tpu.dot_dimension_numbers<[1], [0], [0], [1], [0, 0, 1, 1], [], []>} : vector<8x16xbf16>, vector<16x256xbf16>, vector<8x256xf32> -> vector<8x256xf32>
    %c0_189 = arith.constant 0 : index
    %c0_190 = arith.constant 0 : index
    %274 = vector.load %arg11[%c0_189, %c0_190] : memref<8x1xf32, #tpu.memory_space<vmem>>, vector<8x1xf32>
    %275 = vector.broadcast %274 : vector<8x1xf32> to vector<8x256xf32>
    %276 = arith.addf %273, %275 : vector<8x256xf32>
    %277 = arith.addf %276, %7 : vector<8x256xf32>
    %c0_191 = arith.constant 0 : index
    %c0_192 = arith.constant 0 : index
    %c0_193 = arith.constant 0 : index
    %278 = vector.load %arg12[%c0_191, %c0_192, %c0_193] : memref<1x8x256xf32, #tpu.memory_space<vmem>>, vector<1x8x256xf32>
    %279 = vector.shape_cast %278 : vector<1x8x256xf32> to vector<8x256xf32>
    %280 = vector.shape_cast %277 : vector<8x256xf32> to vector<1x8x256xf32>
    tpu.vector_store %arg12[%c0_191, %c0_192, %c0_193], %280 {strides = array<i32>} : memref<1x8x256xf32, #tpu.memory_space<vmem>>, vector<1x8x256xf32>,
    return
  }
  func.func @transform_0(%arg0: i32) -> (i32, i32, i32) {
    %c0_i32 = arith.constant 0 : i32
    %c0_i32_0 = arith.constant 0 : i32
    %c0_i32_1 = arith.constant 0 : i32
    return %arg0, %c0_i32, %c0_i32_0 : i32, i32, i32
  }
  func.func @transform_1(%arg0: i32) -> (i32, i32) {
    %c0_i32 = arith.constant 0 : i32
    %c0_i32_0 = arith.constant 0 : i32
    %c0_i32_1 = arith.constant 0 : i32
    return %c0_i32, %c0_i32_0 : i32, i32
  }
  func.func @transform_2(%arg0: i32) -> (i32, i32) {
    %c0_i32 = arith.constant 0 : i32
    %c0_i32_0 = arith.constant 0 : i32
    %c0_i32_1 = arith.constant 0 : i32
    return %c0_i32, %c0_i32_0 : i32, i32
  }
  func.func @transform_3(%arg0: i32) -> (i32, i32) {
    %c0_i32 = arith.constant 0 : i32
    %c0_i32_0 = arith.constant 0 : i32
    %c0_i32_1 = arith.constant 0 : i32
    return %c0_i32, %c0_i32_0 : i32, i32
  }
  func.func @transform_4(%arg0: i32) -> (i32, i32, i32) {
    %c0_i32 = arith.constant 0 : i32
    %c0_i32_0 = arith.constant 0 : i32
    %c0_i32_1 = arith.constant 0 : i32
    %c0_i32_2 = arith.constant 0 : i32
    return %c0_i32, %c0_i32_0, %c0_i32_1 : i32, i32, i32
  }
  func.func @transform_5(%arg0: i32) -> (i32, i32, i32) {
    %c0_i32 = arith.constant 0 : i32
    %c0_i32_0 = arith.constant 0 : i32
    %c0_i32_1 = arith.constant 0 : i32
    %c0_i32_2 = arith.constant 0 : i32
    return %c0_i32, %c0_i32_0, %c0_i32_1 : i32, i32, i32
  }
  func.func @transform_6(%arg0: i32) -> (i32, i32, i32) {
    %c0_i32 = arith.constant 0 : i32
    %c0_i32_0 = arith.constant 0 : i32
    %c0_i32_1 = arith.constant 0 : i32
    %c0_i32_2 = arith.constant 0 : i32
    return %c0_i32, %c0_i32_0, %c0_i32_1 : i32, i32, i32
  }
  func.func @transform_7(%arg0: i32) -> (i32, i32, i32) {
    %c0_i32 = arith.constant 0 : i32
    %c0_i32_0 = arith.constant 0 : i32
    %c0_i32_1 = arith.constant 0 : i32
    %c0_i32_2 = arith.constant 0 : i32
    return %c0_i32, %c0_i32_0, %c0_i32_1 : i32, i32, i32
  }
  func.func @transform_8(%arg0: i32) -> (i32, i32, i32) {
    %c0_i32 = arith.constant 0 : i32
    %c0_i32_0 = arith.constant 0 : i32
    %c0_i32_1 = arith.constant 0 : i32
    %c0_i32_2 = arith.constant 0 : i32
    return %c0_i32, %c0_i32_0, %c0_i32_1 : i32, i32, i32
  }
  func.func @transform_9(%arg0: i32) -> (i32, i32) {
    %c0_i32 = arith.constant 0 : i32
    %c0_i32_0 = arith.constant 0 : i32
    %c0_i32_1 = arith.constant 0 : i32
    return %c0_i32, %c0_i32_0 : i32, i32
  }
  func.func @transform_10(%arg0: i32) -> (i32, i32) {
    %c0_i32 = arith.constant 0 : i32
    %c0_i32_0 = arith.constant 0 : i32
    %c0_i32_1 = arith.constant 0 : i32
    return %c0_i32, %c0_i32_0 : i32, i32
  }
  func.func @transform_11(%arg0: i32) -> (i32, i32, i32) {
    %c0_i32 = arith.constant 0 : i32
    %c0_i32_0 = arith.constant 0 : i32
    %c0_i32_1 = arith.constant 0 : i32
    return %arg0, %c0_i32, %c0_i32_0 : i32, i32, i32
  }
}

module attributes {stable_mosaic.version = 11 : i64} {
  func.func @_conv1x1_kernel(%arg0: i32, %arg1: i32, %arg2: memref<1x32x64xbf16, #tpu.memory_space<vmem>>, %arg3: memref<8x32xbf16, #tpu.memory_space<vmem>>, %arg4: memref<8x1xf32, #tpu.memory_space<vmem>>, %arg5: memref<1x8x64xf32, #tpu.memory_space<vmem>>) attributes {dimension_semantics = [#tpu.dimension_semantics<parallel>, #tpu.dimension_semantics<parallel>], iteration_bounds = array<i64: 2, 1>, scalar_prefetch = 0 : i64, scratch_operands = 0 : i64, tpu.core_type = #tpu.core_type<tc>, window_params = [{transform_indices = @transform_0, window_bounds = array<i64: 1, 32, 64>}, {pipeline_mode = #tpu.pipeline_mode<synchronous>, transform_indices = @transform_1, window_bounds = array<i64: 8, 32>}, {pipeline_mode = #tpu.pipeline_mode<synchronous>, transform_indices = @transform_2, window_bounds = array<i64: 8, 1>}, {transform_indices = @transform_3, window_bounds = array<i64: 1, 8, 64>}]} {
    %c0 = arith.constant 0 : index
    %c0_0 = arith.constant 0 : index
    %0 = vector.load %arg3[%c0, %c0_0] : memref<8x32xbf16, #tpu.memory_space<vmem>>, vector<8x32xbf16>
    %c0_1 = arith.constant 0 : index
    %c0_2 = arith.constant 0 : index
    %c0_3 = arith.constant 0 : index
    %1 = vector.load %arg2[%c0_1, %c0_2, %c0_3] : memref<1x32x64xbf16, #tpu.memory_space<vmem>>, vector<1x32x64xbf16>
    %2 = vector.shape_cast %1 : vector<1x32x64xbf16> to vector<32x64xbf16>
    %cst = arith.constant dense<0.000000e+00> : vector<8x64xf32>
    %3 = tpu.matmul %0, %2, %cst {dimension_numbers = #tpu.dot_dimension_numbers<[1], [0], [0], [1], [0, 0, 1, 1], [], []>} : vector<8x32xbf16>, vector<32x64xbf16>, vector<8x64xf32> -> vector<8x64xf32>
    %c0_4 = arith.constant 0 : index
    %c0_5 = arith.constant 0 : index
    %4 = vector.load %arg4[%c0_4, %c0_5] : memref<8x1xf32, #tpu.memory_space<vmem>>, vector<8x1xf32>
    %5 = vector.broadcast %4 : vector<8x1xf32> to vector<8x64xf32>
    %6 = arith.addf %3, %5 : vector<8x64xf32>
    %c0_6 = arith.constant 0 : index
    %c0_7 = arith.constant 0 : index
    %c0_8 = arith.constant 0 : index
    %7 = vector.load %arg5[%c0_6, %c0_7, %c0_8] : memref<1x8x64xf32, #tpu.memory_space<vmem>>, vector<1x8x64xf32>
    %8 = vector.shape_cast %7 : vector<1x8x64xf32> to vector<8x64xf32>
    %9 = vector.shape_cast %6 : vector<8x64xf32> to vector<1x8x64xf32>
    tpu.vector_store %arg5[%c0_6, %c0_7, %c0_8], %9 {strides = array<i32>} : memref<1x8x64xf32, #tpu.memory_space<vmem>>, vector<1x8x64xf32>,
    return
  }
  func.func @transform_0(%arg0: i32, %arg1: i32) -> (i32, i32, i32) {
    %c0_i32 = arith.constant 0 : i32
    %c0_i32_0 = arith.constant 0 : i32
    return %arg0, %c0_i32, %arg1 : i32, i32, i32
  }
  func.func @transform_1(%arg0: i32, %arg1: i32) -> (i32, i32) {
    %c0_i32 = arith.constant 0 : i32
    %c0_i32_0 = arith.constant 0 : i32
    %c0_i32_1 = arith.constant 0 : i32
    return %c0_i32, %c0_i32_0 : i32, i32
  }
  func.func @transform_2(%arg0: i32, %arg1: i32) -> (i32, i32) {
    %c0_i32 = arith.constant 0 : i32
    %c0_i32_0 = arith.constant 0 : i32
    %c0_i32_1 = arith.constant 0 : i32
    return %c0_i32, %c0_i32_0 : i32, i32
  }
  func.func @transform_3(%arg0: i32, %arg1: i32) -> (i32, i32, i32) {
    %c0_i32 = arith.constant 0 : i32
    %c0_i32_0 = arith.constant 0 : i32
    return %arg0, %c0_i32, %arg1 : i32, i32, i32
  }
}

</mosaic_0001>

<bundles_post_ra>
// kernel: unet_conv_block_forward.3
= control target key start
LH: loop header
LB: loop body
LE: loop exit
PB: predicated region body
PF: predicated region fallthrough
CT: control target
= control target key end

     0   :  { %s449_s12 = smov 0   ;;  %s451_s13 = smov 0   ;;  %s488_s0 = inlined_call_operand.vmem [shape: bf16[2,32,64], index: 0, kind: input, shape index: {}]   ;;  %s489_s1 = inlined_call_operand.vmem [shape: bf16[8,32], index: 1, kind: input, shape index: {}]   ;;  %s490_s2 = inlined_call_operand.vmem [shape: f32[8,1], index: 2, kind: input, shape index: {}]   ;;  %s491_s3 = inlined_call_operand.vmem [shape: f32[2,8,64], index: 3, kind: output, shape index: {}]  }
   0x1   :  { %s453_s14 = smov 0  }
   0x2 LB: > { %s25_s15 = sadd.s32 1, %s420_s13  ;;  %p351_p0 = scmp.ge.s32.totalorder %s424_s14, 1  ;;  %s424_s14 = sphi %s453_s14, %s13_s14   ;;  %s420_s13 = sphi %s451_s13, %s493_s13   ;;  %s416_s12 = sphi %s449_s12, %s492_s12  }
   0x3   : > { %p27_p1 = scmp.ge.s32.totalorder %s25_s15, 2  ;;  %p156_p2 = scmp.lt.s32.totalorder %s424_s14, 3 }
   0x5   : > { %s495_s15 = smov (%p27_p1, %s25_s15), 0  ;;  %p157_p3 = pnand %p351_p0, %p156_p2 }
   0x6   : > { %p185_p4 = scmp.lt.s32.totalorder (!%p157_p3), %s416_s12, 1  ;;  %v426_v0 = vmov (!%p157_p3), 0.0   ;;  %vm427_vm0 = vmmov (!%p157_p3), 0   ;;  %v206_v1 = vld [vmem:[%s490_s2] sm:$0xff] (!%p157_p3)  ;;  %v428_v2 = vmov (!%p157_p3), 0   ;;  %vm224_vm1 = vcmask (!%p157_p3), 261120  }
   0x7   : > { %160 = sbr.rel (%p157_p3) target bundleno = 240 (0xf0), region = 32  ;;  %364 = vmatprep.subr.bf16.mxu0 (!%p157_p3), %v426_v0  ;;  %368 = vmatprep.mubr.msk.bf16.mxu0 (!%p157_p3), %vm427_vm0, %v426_v0  ;;  %v201_v5 = vld [vmem:[%s489_s1] sm:$0xf] (!%p157_p3)  ;;  %vm268_vm2 = vcmask (!%p157_p3), 523264  }
   0x8   : > { %399 = vset.pattern.permute.xlu0 (!%p157_p3), %v428_v2 }
   0x9   : > { %209 = vperm.xlu0 (!%p157_p3), %399, %v206_v1  }
   0xe   : > { %s497_s12 = smov (!%p185_p4, %s416_s12), 1 }
   0xf   : > { %s360_s18 = sshll.u32 %s497_s12, 4  ;;  %s354_s24 = sshll.u32 %s497_s12, 3 }
  0x10   : > { %s192_s21 = scalar_lea.vmem %s488_s0, %s360_s18  ;;  %s199_s27 = scalar_lea.vmem %s491_s3, %s354_s24 }
  0x11   : > { %v400_v3 = vld [vmem:[%s192_s21] sm:$0xff]   ;;  %v401_v4 = vld [vmem:[%s192_s21 + $0x8] sm:$0xff]  }
  0x12   : > { %365 = vmatpush3.bf16.msra.mxu0 %v400_v3 }
  0x13   : > { %366 = vmatprep.subr.bf16.mxu0 %v426_v0 }
  0x16   : > { %367 = vmatpush3.bf16.msra.mxu0 %v401_v4 }
  0x19   : > { %369 = vmatmul.mubr.msk.bf16.vlgmr.msra.gmra.mrb[0].mxu0 %vm224_vm1, %v201_v5 }
  0x88   : > { %v210_v6 = vpop.permute.xlu0 %209 }
  0xec   : > { %v262_v7 = vpop.f32.mrb[0].mxu0 }
  0xed   : > { %v263_v8 = vadd.f32 %v262_v7, %v210_v6  ;;  %v370_v9 = vpop.f32.mrb[1].mxu0 }
  0xee   : > { %v265_v10 = vpop.f32.mrb[2].mxu0 }
  0xef   : > { %269 = vst.msk [vmem:[%s199_s27] sm:$0xff] %vm268_vm2, %v263_v8  ;;  %v371_v11 = vpop.f32.mrb[3].mxu0 }
  0xf0 PF: > { %s13_s14 = sadd.s32 1, %s424_s14   ;;  %s492_s12 = smov %s420_s13 }
  0xf1   : > { %p10_p5 = scmp.ge.s32.totalorder %s13_s14, 4   ;;  %s493_s13 = smov %s495_s15 }
  0xf3   :  { %12 = sbr.rel (!%p10_p5) target bundleno = 2 (0x2), region = 62 }

// kernel: unet_conv_block_forward.2
= control target key start
LH: loop header
LB: loop body
LE: loop exit
PB: predicated region body
PF: predicated region fallthrough
CT: control target
= control target key end

     0   :  { %s2575_s17 = smov 0   ;;  %s3365_s0 = inlined_call_operand.vmem [shape: f32[2,16,256], index: 0, kind: input, shape index: {}]   ;;  %s3366_s1 = inlined_call_operand.vmem [shape: f32[2,256], index: 1, kind: input, shape index: {}]   ;;  %s3367_s2 = inlined_call_operand.vmem [shape: bf16[8,16], index: 2, kind: input, shape index: {}]   ;;  %s3368_s3 = inlined_call_operand.vmem [shape: f32[8,1], index: 3, kind: input, shape index: {}]   ;;  %s3369_s4 = inlined_call_operand.vmem [shape: bf16[3,16,144], index: 4, kind: input, shape index: {}]   ;;  %s3370_s5 = inlined_call_operand.vmem [shape: f32[3,16,1], index: 5, kind: input, shape index: {}]   ;;  %s3371_s6 = inlined_call_operand.vmem [shape: bf16[3,4,16], index: 6, kind: input, shape index: {}]   ;;  %s3372_s7 = inlined_call_operand.vmem [shape: f32[3,1,1], index: 7, kind: input, shape index: {}]   ;;  %s3373_s8 = inlined_call_operand.vmem [shape: bf16[3,32,4], index: 8, kind: input, shape index: {}]   ;;  %s3374_s9 = inlined_call_operand.vmem [shape: bf16[8,16], index: 9, kind: input, shape index: {}]   ;;  %s3375_s10 = inlined_call_operand.vmem [shape: f32[8,1], index: 10, kind: input, shape index: {}]   ;;  %s3376_s11 = inlined_call_operand.vmem [shape: f32[2,8,256], index: 11, kind: output, shape index: {}]  }
   0x1 LB: > { %s2287_s18 = sadd.s32 4294967295, %s2496_s17   ;;  %p2291_p0 = scmp.ge.s32.totalorder %s2496_s17, 1  ;;  %s2496_s17 = sphi %s2575_s17, %s21_s17  }
   0x2   : > { %p337_p1 = scmp.lt.s32.totalorder %s2496_s17, 3 }
   0x4   : > { %p338_p2 = pnand %p2291_p0, %p337_p1 }
   0x5   : > { %p377_p3 = scmp.lt.s32.totalorder (!%p338_p2), %s2287_s18, 1  ;;  %v491_v0 = vlaneseq (!%p338_p2)  ;;  %vm449_vm0 = vcmask (!%p338_p2), 138240   ;;  %v2498_v1 = vmov (!%p338_p2), 0.0   ;;  %vm452_vm1 = vcmask (!%p338_p2), 277640   ;;  %s2499_s25 = smov (!%p338_p2), 17  }
   0x6   : > { %341 = sbr.rel (%p338_p2) target bundleno = 4050 (0xfd2), region = 64  ;;  %451 = vst.msk [vmem:[#allocation2 + $0x18] sm:$0xff] (!%p338_p2), %vm449_vm0, %v2498_v1  ;;  %450 = vst.msk [vmem:[#allocation2] sm:$0xff] (!%p338_p2), %vm449_vm0, %v2498_v1  ;;  %v2297_v6 = vld [vmem:[%s3366_s1 + $0x1] ss:$2 sm:$0x3] (!%p338_p2) }
   0x7   : > { %v492_v2 = vshrl.u32 (!%p338_p2), %v491_v0, 7  ;;  %454 = vst.msk [vmem:[#allocation2 + $0x28] sm:$0xff] (!%p338_p2), %vm452_vm1, %v2498_v1  ;;  %453 = vst.msk [vmem:[#allocation2 + $0x10] sm:$0xff] (!%p338_p2), %vm452_vm1, %v2498_v1  ;;  %v446_v12 = vld [vmem:[%s3366_s1] ss:$2 sm:$0x3] (!%p338_p2) }
   0x8   : > { %s2500_s28 = smov (!%p338_p2), 2   ;;  %s2501_s29 = smov (!%p338_p2), 16   ;;  %vm479_vm2 = vcmask (!%p338_p2), 1047688   ;;  %vm553_vm3 = vcmask (!%p338_p2), 15360   ;;  %vm401_vm4 = vcmask (!%p338_p2), 130048   ;;  %vm657_vm5 = vcmask (!%p338_p2), 146432  }
   0x9   : > { %v497_v8 = vsub.s32 (!%p338_p2), 1, %v492_v2  ;;  %v493_v9 = vsub.s32 (!%p338_p2), 0, %v492_v2  ;;  %s2502_s30 = smov (!%p338_p2), 18   ;;  %s2503_s12 = smov (!%p338_p2), 32   ;;  %vm697_vm6 = vcmask (!%p338_p2), 261120   ;;  %vm762_vm7 = vcmask (!%p338_p2), 277504  }
   0xa   : > { %s2504_s13 = smov (!%p338_p2), 34   ;;  %s2505_s14 = smov (!%p338_p2), 127   ;;  %vm527_vm8 = vcmask (!%p338_p2), 1039360   ;;  %vm576_vm9 = vcmask (!%p338_p2), 1031168   ;;  %vm615_vm10 = vcmask (!%p338_p2), 916480   ;;  %vm640_vm11 = vcmask (!%p338_p2), 908288  }
   0xb   : > { %v548_v10 = vrot.slane (!%p338_p2), %v2297_v6, %v497_v8  ;;  %v544_v11 = vrot.slane (!%p338_p2), %v2297_v6, %v493_v9  ;;  %v2617_v13 = vrot.slane (!%p338_p2), %v446_v12, %v497_v8  ;;  %v2619_v14 = vrot.slane (!%p338_p2), %v446_v12, %v493_v9  ;;  %s2506_s15 = smov (!%p338_p2), 111   ;;  %s2507_s16 = smov (!%p338_p2), 126  }
   0xc   : > { %s2509_s20 = smov (!%p338_p2), 110   ;;  %s2510_s21 = smov (!%p338_p2), 96   ;;  %vm680_vm12 = vcmask (!%p338_p2), 900096   ;;  %vm720_vm13 = vcmask (!%p338_p2), 785408   ;;  %vm745_vm14 = vcmask (!%p338_p2), 777216   ;;  %vm785_vm15 = vcmask (!%p338_p2), 769024  }
   0xd   : > { %s3378_s18 = smov (!%p377_p3, %s2287_s18), 1  ;;  %s2513_s26 = smov 94   ;;  %vm2514_vm1 = vmmov 0  }
   0xe   : > { %s2348_s19 = sshll.u32 %s3378_s18, 5 }
   0xf   : > { %s381_s22 = scalar_lea.vmem %s3365_s0, %s2348_s19  ;;  %s2508_s19 = smov 112  }
  0x10   : > { %v2595_v3 = vld [vmem:[%s381_s22 + $0x10] sm:$0xff]  ;;  %v2597_v4 = vld [vmem:[%s381_s22] sm:$0xff]  ;;  %v2599_v5 = vld [vmem:[%s381_s22 + $0x18] sm:$0xff] }
  0x11   : > { %467 = vrot.lane.b32.xlu1 %v2595_v3, %s2499_s25  ;;  %463 = vrot.lane.b32.xlu0 %v2597_v4, %s2499_s25  ;;  %v2608_v7 = vld [vmem:[%s381_s22 + $0x8] sm:$0xff]  ;;  %s2511_s22 = smov 95  }
  0x15   : > { %469 = vrot.lane.b32.xlu1 %v2599_v5, %s2499_s25  ;;  %465 = vrot.lane.b32.xlu0 %v2608_v7, %s2499_s25 }
  0x19   : > { %551 = vrot.lane.b32.xlu1 %v548_v10, %s2500_s28  ;;  %549 = vrot.lane.b32.xlu0 %v544_v11, %s2500_s28 }
  0x1d   : > { %591 = vrot.lane.b32.xlu1 %v2617_v13, %s2501_s29  ;;  %589 = vrot.lane.b32.xlu0 %v2619_v14, %s2501_s29 }
  0x21   : > { %655 = vrot.lane.b32.xlu1 %v548_v10, %s2502_s30  ;;  %653 = vrot.lane.b32.xlu0 %v544_v11, %s2502_s30 }
  0x25   : > { %695 = vrot.lane.b32.xlu1 %v2617_v13, %s2503_s12  ;;  %693 = vrot.lane.b32.xlu0 %v2619_v14, %s2503_s12 }
  0x29   : > { %760 = vrot.lane.b32.xlu1 %v548_v10, %s2504_s13  ;;  %758 = vrot.lane.b32.xlu0 %v544_v11, %s2504_s13 }
  0x83   : > { %v468_v15 = vpop.permute.xlu1 %467  ;;  %v464_v16 = vpop.permute.xlu0 %463 }
  0x84   : > { %483 = vst.msk [vmem:[#allocation2 + $0x18] sm:$0xff] %vm479_vm2, %v468_v15  ;;  %480 = vst.msk [vmem:[#allocation2] sm:$0xff] %vm479_vm2, %v464_v16 }
  0x87   : > { %v470_v17 = vpop.permute.xlu1 %469  ;;  %v466_v18 = vpop.permute.xlu0 %465 }
  0x88   : > { %v2628_v19 = vsel %vm449_vm0, %v468_v15, %v470_v17  ;;  %485 = vst.msk [vmem:[#allocation2 + $0x28] sm:$0xff] %vm449_vm0, %v470_v17  ;;  %v2632_v20 = vsel %vm449_vm0, %v464_v16, %v466_v18  ;;  %482 = vst.msk [vmem:[#allocation2 + $0x10] sm:$0xff] %vm449_vm0, %v466_v18 }
  0x89   : > { %v502_v21 = vmul.f32 %v2617_v13, %v2632_v20  ;;  %v504_v22 = vmul.f32 %v2617_v13, %v2628_v19  ;;  %v2679_v39 = vpack.c.bf16 %v2628_v19, %v2632_v20 }
  0x8b   : > { %v2639_v23 = vld [vmem:[#allocation2] sm:$0xff]  ;;  %v2641_v24 = vld [vmem:[#allocation2 + $0x18] sm:$0xff]  ;;  %v506_v25 = vpack.c.bf16 %v504_v22, %v502_v21  ;;  %v2651_v29 = vpop.permute.xlu0 %549  ;;  %v2653_v30 = vpop.permute.xlu1 %551 }
  0x8c   : > { %v2645_v26 = vpack.c.bf16 %v2641_v24, %v2639_v23  ;;  %v501_v27 = vmul.f32 %v2639_v23, %v2619_v14  ;;  %v503_v28 = vmul.f32 %v2641_v24, %v2619_v14  ;;  %v558_v36 = vmul.f32 %v2651_v29, %v2639_v23 }
  0x8d   : > { %832 = vmatprep.subr.bf16.mxu1 %v506_v25  ;;  %v561_v37 = vmul.f32 %v2651_v29, %v2641_v24  ;;  %v2693_v44 = vsel %vm553_vm3, %v2651_v29, %v2653_v30  ;;  %vm961_vm3 = vcmask 31744  }
  0x8e   : > { %521 = vrot.lane.b32.xlu0 %v2645_v26, %s2505_s14  ;;  %v505_v31 = vpack.c.bf16 %v503_v28, %v501_v27  ;;  %v559_v51 = vmul.f32 %v2693_v44, %v2632_v20  ;;  %v562_v52 = vmul.f32 %v2693_v44, %v2628_v19 }
  0x8f   : > { %v2657_v32 = vld [vmem:[#allocation2 + $0x10] sm:$0xff]  ;;  %v2659_v33 = vld [vmem:[#allocation2 + $0x28] sm:$0xff]  ;;  %v2669_v35 = vpop.permute.xlu0 %589  ;;  %v2675_v38 = vpop.permute.xlu1 %591  ;;  %v564_v42 = vpack.c.bf16 %v561_v37, %v558_v36 }
  0x90   : > { %v2663_v34 = vpack.c.bf16 %v2659_v33, %v2657_v32  ;;  %833 = vmatpush1.bf16.msra.mxu1 %v505_v31  ;;  %v560_v40 = vmul.f32 %v2657_v32, %v2653_v30  ;;  %v563_v41 = vmul.f32 %v2659_v33, %v2653_v30  ;;  %v599_v43 = vmul.f32 %v2657_v32, %v2675_v38 }
  0x91   : > { %v602_v46 = vmul.f32 %v2659_v33, %v2675_v38  ;;  %v597_v47 = vmul.f32 %v2669_v35, %v2639_v23  ;;  %v600_v48 = vmul.f32 %v2669_v35, %v2641_v24  ;;  %v2718_v57 = vsel %vm401_vm4, %v2669_v35, %v2675_v38 }
  0x92   : > { %638 = vrot.lane.b32.xlu0 %v2663_v34, %s2506_s15  ;;  %525 = vrot.lane.b32.xlu1 %v2663_v34, %s2505_s14  ;;  %v566_v45 = vpack.c.bf16 %v563_v41, %v560_v40  ;;  %v565_v58 = vpack.c.bf16 %v562_v52, %v559_v51  ;;  %v598_v60 = vmul.f32 %v2718_v57, %v2632_v20  ;;  %v2441_v41 = vld [vmem:[%s3369_s4 + $0x4] ss:$8 sps:$4 sm:$0xff]  }
  0x93   : > { %v2701_v49 = vpop.permute.xlu0 %653  ;;  %v2705_v50 = vpop.permute.xlu1 %655  ;;  %v605_v53 = vpack.c.bf16 %v602_v46, %v599_v43  ;;  %v603_v54 = vpack.c.bf16 %v600_v48, %v597_v47  ;;  %v601_v61 = vmul.f32 %v2718_v57, %v2628_v19  ;;  %2300 = vmatprep.mubr.msk.bf16.mxu1 %vm401_vm4, %v2441_v41 }
  0x94   : > { %v662_v55 = vmul.f32 %v2701_v49, %v2639_v23  ;;  %v665_v56 = vmul.f32 %v2701_v49, %v2641_v24  ;;  %v664_v63 = vmul.f32 %v2705_v50, %v2657_v32  ;;  %v667_v0 = vmul.f32 %v2705_v50, %v2659_v33 }
  0x95   : > { %v604_v2 = vpack.c.bf16 %v601_v61, %v598_v60  ;;  %v2740_v9 = vsel %vm657_vm5, %v2701_v49, %v2705_v50 }
  0x96   : > { %636 = vrot.lane.b32.xlu1 %v2679_v39, %s2506_s15  ;;  %523 = vrot.lane.b32.xlu0 %v2679_v39, %s2505_s14  ;;  %v668_v59 = vpack.c.bf16 %v665_v56, %v662_v55  ;;  %v670_v11 = vpack.c.bf16 %v667_v0, %v664_v63  ;;  %v663_v12 = vmul.f32 %v2740_v9, %v2632_v20 }
  0x97   : > { %v2726_v62 = vpop.permute.xlu1 %695  ;;  %v2742_v10 = vpop.permute.xlu0 %693  ;;  %v666_v16 = vmul.f32 %v2740_v9, %v2628_v19 }
  0x98   : > { %v704_v6 = vmul.f32 %v2726_v62, %v2657_v32  ;;  %v707_v8 = vmul.f32 %v2726_v62, %v2659_v33  ;;  %v702_v17 = vmul.f32 %v2742_v10, %v2639_v23  ;;  %v705_v18 = vmul.f32 %v2742_v10, %v2641_v24 }
  0x99   : > { %v2757_v21 = vsel %vm697_vm6, %v2742_v10, %v2726_v62  ;;  %v669_v22 = vpack.c.bf16 %v666_v16, %v663_v12  ;;  %vm968_vm6 = vcmask 1041408  }
  0x9a   : > { %574 = vrot.lane.b32.xlu0 %v566_v45, %s2507_s16  ;;  %570 = vrot.lane.b32.xlu1 %v564_v42, %s2507_s16  ;;  %v710_v15 = vpack.c.bf16 %v707_v8, %v704_v6  ;;  %v708_v25 = vpack.c.bf16 %v705_v18, %v702_v17  ;;  %v703_v27 = vmul.f32 %v2757_v21, %v2632_v20 }
  0x9b   : > { %v706_v28 = vmul.f32 %v2757_v21, %v2628_v19  ;;  %v2765_v31 = vpop.permute.xlu1 %760  ;;  %v2767_v36 = vpop.permute.xlu0 %758 }
  0x9c   : > { %v2773_v40 = vsel %vm762_vm7, %v2767_v36, %v2765_v31  ;;  %v769_v42 = vmul.f32 %v2765_v31, %v2657_v32  ;;  %v772_v43 = vmul.f32 %v2765_v31, %v2659_v33 }
  0x9d   : > { %v709_v37 = vpack.c.bf16 %v706_v28, %v703_v27  ;;  %v768_v45 = vmul.f32 %v2773_v40, %v2632_v20  ;;  %v771_v46 = vmul.f32 %v2773_v40, %v2628_v19  ;;  %v767_v20 = vmul.f32 %v2767_v36, %v2639_v23  ;;  %v458_v23 = vld [vmem:[%s3370_s5 + $0x8] sm:$0xff] }
  0x9e   : > { %613 = vrot.lane.b32.xlu1 %v605_v53, %s2508_s19  ;;  %609 = vrot.lane.b32.xlu0 %v603_v54, %s2508_s19  ;;  %v775_v32 = vpack.c.bf16 %v772_v43, %v769_v42  ;;  %v770_v19 = vmul.f32 %v2767_v36, %v2641_v24 }
  0x9f   : > { %v774_v33 = vpack.c.bf16 %v771_v46, %v768_v45 }
  0xa2   : > { %572 = vrot.lane.b32.xlu1 %v565_v58, %s2507_s16  ;;  %674 = vrot.lane.b32.xlu0 %v668_v59, %s2509_s20 }
  0xa6   : > { %634 = vrot.lane.b32.xlu1 %v2645_v26, %s2506_s15  ;;  %611 = vrot.lane.b32.xlu0 %v604_v2, %s2508_s19 }
  0xaa   : > { %678 = vrot.lane.b32.xlu1 %v670_v11, %s2509_s20  ;;  %718 = vrot.lane.b32.xlu0 %v710_v15, %s2510_s21 }
  0xae   : > { %676 = vrot.lane.b32.xlu0 %v669_v22, %s2509_s20  ;;  %714 = vrot.lane.b32.xlu1 %v708_v25, %s2510_s21 }
  0xb2   : > { %741 = vrot.lane.b32.xlu0 %v2679_v39, %s2511_s22  ;;  %716 = vrot.lane.b32.xlu1 %v709_v37, %s2510_s21  ;;  %v2512_v39 = vmov 0  }
  0xb3   : > { %2437 = vset.pattern.permute.xlu0 %v2512_v39  ;;  %2438 = vset.pattern.permute.xlu1 %v2512_v39 }
  0xb4   : > { %437 = vmatprep.mubr.bf16.mxu0 %v2512_v39 }
  0xb6   : > { %739 = vrot.lane.b32.xlu0 %v2645_v26, %s2511_s22  ;;  %743 = vrot.lane.b32.xlu1 %v2663_v34, %s2511_s22  ;;  %v457_v26 = vld [vmem:[%s3370_s5] sm:$0xff]  ;;  %v773_v34 = vpack.c.bf16 %v770_v19, %v767_v20 }
  0xba   : > { %783 = vrot.lane.b32.xlu0 %v775_v32, %s2513_s26  ;;  %781 = vrot.lane.b32.xlu1 %v774_v33, %s2513_s26 }
  0xbe   : > { %779 = vrot.lane.b32.xlu1 %v773_v34, %s2513_s26  ;;  %812 = vperm.xlu0 %2437, %v457_v26  }
  0xc2   : > { %817 = vperm.xlu1 %2438, %v458_v23   ;;  %v2439_v23 = vld [vmem:[%s3369_s4] ss:$8 sps:$4 sm:$0xff]  }
 0x100   : > { %v522_v24 = vpop.permute.xlu0 %521 }
 0x104   : > { %v526_v47 = vpop.permute.xlu1 %525  ;;  %v639_v48 = vpop.permute.xlu0 %638 }
 0x108   : > { %v637_v51 = vpop.permute.xlu1 %636  ;;  %v524_v52 = vpop.permute.xlu0 %523 }
 0x109   : > { %v529_v53 = vsel %vm527_vm8, %v524_v52, %v526_v47  ;;  %v528_v54 = vsel %vm527_vm8, %v522_v24, %v524_v52  ;;  %v642_v12 = vsel %vm640_vm11, %v637_v51, %v639_v48  ;;  %v394_v24 = vpack.c.bf16 %v2599_v5, %v2608_v7 }
 0x10a   : > { %834 = vmatprep.subr.bf16.mxu1 %v529_v53  ;;  %v393_v47 = vpack.c.bf16 %v2595_v3, %v2597_v4 }
 0x10b   : > { %835 = vmatpush1.bf16.msra.mxu1 %v528_v54  ;;  %405 = vmatprep.subr.bf16.mxu0 %v394_v24 }
 0x10c   : > { %v571_v55 = vpop.permute.xlu1 %570  ;;  %v575_v56 = vpop.permute.xlu0 %574  ;;  %406 = vmatpush1.bf16.msra.mxu0 %v393_v47 }
 0x10d   : > { %2365 = vmatprep.subr.bf16.mxu0 %v2498_v1 }
 0x110   : > { %v614_v58 = vpop.permute.xlu1 %613  ;;  %v610_v59 = vpop.permute.xlu0 %609 }
 0x114   : > { %v573_v60 = vpop.permute.xlu1 %572  ;;  %v675_v61 = vpop.permute.xlu0 %674 }
 0x115   : > { %v578_v63 = vsel %vm576_vm9, %v573_v60, %v575_v56  ;;  %v577_v0 = vsel %vm576_vm9, %v571_v55, %v573_v60 }
 0x116   : > { %836 = vmatprep.subr.bf16.mxu1 %v578_v63 }
 0x117   : > { %837 = vmatpush1.bf16.msra.mxu1 %v577_v0 }
 0x118   : > { %v635_v2 = vpop.permute.xlu1 %634  ;;  %v612_v6 = vpop.permute.xlu0 %611 }
 0x119   : > { %v617_v8 = vsel %vm615_vm10, %v612_v6, %v614_v58  ;;  %v616_v11 = vsel %vm615_vm10, %v610_v59, %v612_v6  ;;  %v641_v17 = vsel %vm640_vm11, %v635_v2, %v637_v51 }
 0x11a   : > { %838 = vmatprep.subr.bf16.mxu1 %v617_v8 }
 0x11b   : > { %839 = vmatpush1.bf16.msra.mxu1 %v616_v11 }
 0x11c   : > { %v679_v15 = vpop.permute.xlu1 %678  ;;  %840 = vmatprep.subr.bf16.mxu1 %v642_v12  ;;  %v719_v16 = vpop.permute.xlu0 %718 }
 0x11f   : > { %841 = vmatpush1.bf16.msra.mxu1 %v641_v17  ;;  %v392_v17 = vld [vmem:[%s3367_s2] sm:$0xf] }
 0x120   : > { %v715_v18 = vpop.permute.xlu1 %714  ;;  %v677_v22 = vpop.permute.xlu0 %676  ;;  %2296 = vmatmul.mubr.msk.bf16.vlgmr.msra.gmra.mrb[0].mxu0 %vm401_vm4, %v392_v17 }
 0x121   : > { %v682_v25 = vsel %vm680_vm12, %v677_v22, %v679_v15  ;;  %v681_v27 = vsel %vm680_vm12, %v675_v61, %v677_v22  ;;  %2367 = vmatprep.mubr.msk.bf16.mxu0 %vm2514_vm1, %v2498_v1 }
 0x122   : > { %842 = vmatprep.subr.bf16.mxu1 %v682_v25 }
 0x123   : > { %843 = vmatpush1.bf16.msra.mxu1 %v681_v27 }
 0x124   : > { %v717_v28 = vpop.permute.xlu1 %716  ;;  %v742_v37 = vpop.permute.xlu0 %741 }
 0x125   : > { %v722_v41 = vsel %vm720_vm13, %v717_v28, %v719_v16  ;;  %v721_v42 = vsel %vm720_vm13, %v715_v18, %v717_v28 }
 0x126   : > { %844 = vmatprep.subr.bf16.mxu1 %v722_v41  ;;  %v2442_v41 = vld [vmem:[%s3373_s8] sm:$0xff]  }
 0x127   : > { %845 = vmatpush1.bf16.msra.mxu1 %v721_v42  ;;  %v2302_v42 = vld [vmem:[%s3372_s7] ss:$0 sm:$0xff] }
 0x128   : > { %v744_v43 = vpop.permute.xlu1 %743  ;;  %v740_v45 = vpop.permute.xlu0 %739 }
 0x129   : > { %v747_v46 = vsel %vm745_vm14, %v742_v37, %v744_v43  ;;  %v746_v32 = vsel %vm745_vm14, %v740_v45, %v742_v37  ;;  %v891_v37 = vld [vmem:[%s3371_s6] sm:$0x3] }
 0x12a   : > { %846 = vmatprep.subr.bf16.mxu1 %v747_v46 }
 0x12b   : > { %847 = vmatpush1.bf16.msra.mxu1 %v746_v32 }
 0x12c   : > { %v782_v33 = vpop.permute.xlu1 %781  ;;  %v784_v20 = vpop.permute.xlu0 %783 }
 0x12d   : > { %v787_v19 = vsel %vm785_vm15, %v782_v33, %v784_v20 }
 0x12e   : > { %848 = vmatprep.subr.bf16.mxu1 %v787_v19 }
 0x130   : > { %v780_v26 = vpop.permute.xlu1 %779 }
 0x131   : > { %v786_v34 = vsel %vm785_vm15, %v780_v26, %v782_v33 }
 0x132   : > { %849 = vmatpush1.bf16.msra.mxu1 %v786_v34  ;;  %v2443_v34 = vld [vmem:[%s3373_s8 + $0x8] sm:$0xff]  }
 0x133   : > { %2377 = vmatprep.subr.bf16.mxu1 %v2498_v1 }
 0x135   : > { %865 = vmatmul.mubr.bf16.vlgmr.msra.gmra.mrb[0].mxu1 %v2439_v23 }
 0x136   : > { %2379 = vmatprep.mubr.msk.bf16.mxu1 %vm2514_vm1, %v2498_v1 }
 0x13d   : > { %v813_v48 = vpop.permute.xlu0 %812 }
 0x141   : > { %v818_v52 = vpop.permute.xlu1 %817 }
 0x208   : > { %v866_v51 = vpop.f32.mrb[0].mxu1 }
 0x209   : > { %v2835_v53 = vadd.f32 %v866_v51, %v813_v48  ;;  %v868_v54 = vpop.f32.mrb[1].mxu1 }
 0x20a   : > { %v2837_v55 = vadd.f32 %v868_v54, %v813_v48  ;;  %v870_v56 = vpop.f32.mrb[2].mxu1 }
 0x20b   : > { %v875_v58 = vmax.f32 %v2835_v53, 0.0  ;;  %v2840_v59 = vadd.f32 %v870_v56, %v818_v52  ;;  %v872_v60 = vpop.f32.mrb[3].mxu1 }
 0x20c   : > { %v876_v61 = vmax.f32 %v2837_v55, 0.0  ;;  %v2843_v63 = vadd.f32 %v872_v60, %v818_v52 }
 0x20d   : > { %v877_v0 = vmax.f32 %v2840_v59, 0.0  ;;  %v879_v2 = vadd.f32 %v875_v58, %v2597_v4 }
 0x20e   : > { %v880_v6 = vadd.f32 %v876_v61, %v2608_v7  ;;  %v878_v8 = vmax.f32 %v2843_v63, 0.0 }
 0x20f   : > { %v881_v11 = vadd.f32 %v877_v0, %v2595_v3 }
 0x210   : > { %v882_v12 = vadd.f32 %v878_v8, %v2599_v5  ;;  %v883_v15 = vadd.f32 %v880_v6, %v879_v2 }
 0x212   : > { %884 = vadd.xlane.f32.xlu1 %v883_v15  ;;  %v886_v16 = vadd.f32 %v882_v12, %v881_v11 }
 0x214   : > { %887 = vadd.xlane.f32.xlu0 %v886_v16 }
 0x29f   : > { %v885_v18 = vpop.xlane.xlu1 %884 }
 0x2a0   : > { %v889_v25 = vmul.f32 0.00390625, %v885_v18 }
 0x2a1   : > { %v888_v22 = vpop.xlane.xlu0 %887 }
 0x2a2   : > { %v890_v27 = vmul.f32 0.00390625, %v888_v22 }
 0x2a4   : > { %v892_v28 = vpack.c.bf16 %v890_v27, %v889_v25 }
 0x2a6   : > { %2366 = vmatpush3.bf16.msra.mxu0 %v892_v28 }
 0x2a9   : > { %2368 = vmatmul.mubr.msk.bf16.vlgmr.msra.gmra.mrb[4].mxu0 %vm401_vm4, %v891_v37 }
 0x2aa   : > { %2373 = vmatprep.mubr.msk.bf16.mxu0 %vm961_vm3, %v2442_v41 }
 0x37c   : > { %v930_v43 = vpop.f32.mrb[4].mxu0 }
 0x37d   : > { %vm936_vm5 = vcmp.ge.f32.partialorder %v930_v43, 0.0  ;;  %v944_v45 = vmul.f32 %v2302_v42, %v930_v43  ;;  %v2369_v46 = vpop.f32.mrb[5].mxu0 }
 0x37e   : > { %v933_v32 = vpop.f32.mrb[6].mxu0 }
 0x37f   : > { %v945_v33 = vsel %vm936_vm5, %v930_v43, %v944_v45  ;;  %v2370_v20 = vpop.f32.mrb[7].mxu0 }
 0x380   : > { %v950_v19 = vpack.c.bf16 %v945_v33, %v945_v33 }
 0x382   : > { %2409 = vmatprep.subr.msk.bf16.mxu0 %vm968_vm6, %v950_v19  ;;  %v970_v26 = vsel %vm968_vm6, %v950_v19, 0 }
 0x383   : > { %2372 = vmatpush3.bf16.msra.mxu0 %v970_v26 }
 0x386   : > { %2374 = vmatmul.mubr.msk.bf16.vlgmr.msra.gmra.mrb[8].mxu0 %vm961_vm3, %v2443_v34 }
 0x459   : > { %v2375_v23 = vpop.f32.mrb[8].mxu0 }
 0x45a   : > { %v1006_v24 = vpop.f32.mrb[9].mxu0 }
 0x45b   : > { %v1021_v47 = vmax.f32 %v1006_v24, %v2375_v23  ;;  %v2376_v48 = vpop.f32.mrb[10].mxu0 }
 0x45c   : > { %v1009_v51 = vpop.f32.mrb[11].mxu0 }
 0x45d   : > { %v1023_v52 = vsub.f32 %v1006_v24, %v1021_v47  ;;  %v1029_v54 = vsub.f32 %v2375_v23, %v1021_v47  ;;  %v1022_v56 = vmax.f32 %v1009_v51, %v2376_v48 }
 0x45f   : > { %v1025_v60 = vmul.f32 1.442695, %v1023_v52  ;;  %v1031_v2 = vmul.f32 1.442695, %v1029_v54  ;;  %v1024_v6 = vsub.f32 %v1009_v51, %v1022_v56  ;;  %v1030_v11 = vsub.f32 %v2376_v48, %v1022_v56 }
 0x461   : > { %2454 = vpow2.f32 %v1025_v60  ;;  %v1027_v12 = vmul.f32 1.442695, %v1024_v6  ;;  %v1033_v15 = vmul.f32 1.442695, %v1030_v11 }
 0x462   : > { %2456 = vpow2.f32 %v1031_v2 }
 0x463   : > { %2458 = vpow2.f32 %v1027_v12 }
 0x464   : > { %2460 = vpow2.f32 %v1033_v15 }
 0x46b   : > { %v2455_v16 = vpop.eup %2454 }
 0x46c   : > { %v2457_v17 = vpop.eup %2456 }
 0x46d   : > { %v2459_v18 = vpop.eup %2458  ;;  %v1035_v22 = vadd.f32 %v2457_v17, %v2455_v16 }
 0x46e   : > { %v2461_v25 = vpop.eup %2460 }
 0x46f   : > { %2462 = vrcp.f32 %v1035_v22  ;;  %v1036_v27 = vadd.f32 %v2461_v25, %v2459_v18 }
 0x471   : > { %2464 = vrcp.f32 %v1036_v27 }
 0x479   : > { %v2463_v28 = vpop.eup %2462 }
 0x47a   : > { %v1039_v37 = vmul.f32 %v2463_v28, %v2455_v16  ;;  %v1055_v41 = vmul.f32 %v2463_v28, %v2457_v17 }
 0x47b   : > { %v2465_v42 = vpop.eup %2464 }
 0x47c   : > { %1043 = vperm.xlu0 %2437, %v1039_v37   ;;  %v1040_v43 = vmul.f32 %v2465_v42, %v2459_v18  ;;  %v1056_v45 = vmul.f32 %v2465_v42, %v2461_v25 }
 0x47e   : > { %1048 = vperm.xlu1 %2438, %v1040_v43  }
 0x480   : > { %1064 = vperm.xlu0 %2437, %v1056_v45  }
 0x482   : > { %1059 = vperm.xlu1 %2438, %v1055_v41  }
 0x4fb   : > { %v1044_v46 = vpop.permute.xlu0 %1043 }
 0x4fc   : > { %v1051_v19 = vmul.f32 %v1044_v46, %v2597_v4  ;;  %v1052_v26 = vmul.f32 %v1044_v46, %v2608_v7 }
 0x4fd   : > { %v1049_v32 = vpop.permute.xlu1 %1048 }
 0x4fe   : > { %v1053_v4 = vmul.f32 %v1049_v32, %v2595_v3  ;;  %v1054_v7 = vmul.f32 %v1049_v32, %v2599_v5 }
 0x4ff   : > { %v1065_v33 = vpop.permute.xlu0 %1064 }
 0x500   : > { %v1069_v24 = vmul.f32 %v1065_v33, %v877_v0  ;;  %v1070_v47 = vmul.f32 %v1065_v33, %v878_v8 }
 0x501   : > { %v1060_v20 = vpop.permute.xlu1 %1059 }
 0x502   : > { %v1067_v34 = vmul.f32 %v1060_v20, %v875_v58  ;;  %v1068_v23 = vmul.f32 %v1060_v20, %v876_v61  ;;  %v2904_v53 = vadd.f32 %v1069_v24, %v1053_v4  ;;  %v2906_v55 = vadd.f32 %v1070_v47, %v1054_v7 }
 0x504   : > { %v2894_v48 = vadd.f32 %v1067_v34, %v1051_v19  ;;  %v2896_v51 = vadd.f32 %v1068_v23, %v1052_v26 }
 0x506   : > { %1087 = vrot.lane.b32.xlu0 %v2896_v51, %s2499_s25  ;;  %1085 = vrot.lane.b32.xlu1 %v2894_v48, %s2499_s25 }
 0x50a   : > { %1091 = vrot.lane.b32.xlu0 %v2906_v55, %s2499_s25  ;;  %1089 = vrot.lane.b32.xlu1 %v2904_v53, %s2499_s25 }
 0x578   : > { %v1088_v58 = vpop.permute.xlu0 %1087  ;;  %v1086_v3 = vpop.permute.xlu1 %1085 }
 0x579   : > { %1103 = vst.msk [vmem:[#allocation2 + $0x10] sm:$0xff] %vm449_vm0, %v1088_v58  ;;  %v2915_v5 = vsel %vm449_vm0, %v1086_v3, %v1088_v58 }
 0x57a   : > { %1101 = vst.msk [vmem:[#allocation2] sm:$0xff] %vm479_vm2, %v1086_v3  ;;  %v1112_v0 = vmul.f32 %v2915_v5, %v2617_v13  ;;  %v1150_v32 = vmul.f32 %v2915_v5, %v2693_v44  ;;  %v1180_v7 = vmul.f32 %v2915_v5, %v2718_v57 }
 0x57c   : > { %v1092_v59 = vpop.permute.xlu0 %1091  ;;  %v1090_v61 = vpop.permute.xlu1 %1089 }
 0x57d   : > { %1106 = vst.msk [vmem:[#allocation2 + $0x28] sm:$0xff] %vm449_vm0, %v1092_v59  ;;  %v2919_v63 = vsel %vm449_vm0, %v1090_v61, %v1092_v59 }
 0x57e   : > { %1104 = vst.msk [vmem:[#allocation2 + $0x18] sm:$0xff] %vm479_vm2, %v1090_v61  ;;  %v1114_v8 = vmul.f32 %v2919_v63, %v2617_v13  ;;  %v1210_v17 = vpack.c.bf16 %v2919_v63, %v2915_v5  ;;  %v1153_v45 = vmul.f32 %v2919_v63, %v2693_v44  ;;  %v1183_v47 = vmul.f32 %v2919_v63, %v2718_v57 }
 0x580   : > { %v1116_v52 = vpack.c.bf16 %v1114_v8, %v1112_v0  ;;  %v2928_v56 = vld [vmem:[#allocation2 + $0x10] sm:$0xff]  ;;  %v1156_v20 = vpack.c.bf16 %v1153_v45, %v1150_v32  ;;  %v1186_v3 = vpack.c.bf16 %v1183_v47, %v1180_v7 }
 0x581   : > { %v2926_v54 = vld [vmem:[#allocation2] sm:$0xff]  ;;  %v1181_v37 = vmul.f32 %v2928_v56, %v2675_v38  ;;  %v1151_v41 = vmul.f32 %v2928_v56, %v2653_v30  ;;  %v1235_v4 = vmul.f32 %v2928_v56, %v2705_v50  ;;  %v1265_v8 = vmul.f32 %v2928_v56, %v2726_v62 }
 0x582   : > { %1381 = vmatprep.subr.bf16.mxu0 %v1116_v52  ;;  %v1111_v12 = vmul.f32 %v2926_v54, %v2619_v14  ;;  %v1149_v22 = vmul.f32 %v2926_v54, %v2651_v29  ;;  %v1179_v33 = vmul.f32 %v2926_v54, %v2669_v35  ;;  %v1233_v34 = vmul.f32 %v2926_v54, %v2701_v49 }
 0x583   : > { %v1263_v0 = vmul.f32 %v2926_v54, %v2742_v10 }
 0x584   : > { %v2930_v60 = vld [vmem:[#allocation2 + $0x28] sm:$0xff] }
 0x585   : > { %v2932_v2 = vld [vmem:[#allocation2 + $0x18] sm:$0xff]  ;;  %v2936_v6 = vpack.c.bf16 %v2930_v60, %v2928_v56  ;;  %v1184_v27 = vmul.f32 %v2930_v60, %v2675_v38  ;;  %v1154_v28 = vmul.f32 %v2930_v60, %v2653_v30  ;;  %v1238_v24 = vmul.f32 %v2930_v60, %v2705_v50 }
 0x586   : > { %v2940_v11 = vpack.c.bf16 %v2932_v2, %v2926_v54  ;;  %v1113_v15 = vmul.f32 %v2932_v2, %v2619_v14  ;;  %v1152_v18 = vmul.f32 %v2932_v2, %v2651_v29  ;;  %v1182_v46 = vmul.f32 %v2932_v2, %v2669_v35 }
 0x587   : > { %1135 = vrot.lane.b32.xlu0 %v2936_v6, %s2505_s14  ;;  %v1187_v42 = vpack.c.bf16 %v1184_v27, %v1181_v37  ;;  %v1157_v43 = vpack.c.bf16 %v1154_v28, %v1151_v41  ;;  %v1236_v26 = vmul.f32 %v2932_v2, %v2701_v49  ;;  %v1241_v58 = vpack.c.bf16 %v1238_v24, %v1235_v4  ;;  %v2444_v28 = vld [vmem:[%s3369_s4 + $0x14] ss:$8 sps:$4 sm:$0xff]  }
 0x588   : > { %1131 = vrot.lane.b32.xlu1 %v2940_v11, %s2505_s14  ;;  %v1115_v16 = vpack.c.bf16 %v1113_v15, %v1111_v12  ;;  %v1155_v25 = vpack.c.bf16 %v1152_v18, %v1149_v22  ;;  %v1185_v19 = vpack.c.bf16 %v1182_v46, %v1179_v33  ;;  %v1266_v59 = vmul.f32 %v2932_v2, %v2742_v10 }
 0x589   : > { %v1239_v23 = vpack.c.bf16 %v1236_v26, %v1233_v34  ;;  %v1268_v61 = vmul.f32 %v2930_v60, %v2726_v62  ;;  %v1267_v15 = vmul.f32 %v2919_v63, %v2757_v21  ;;  %v1264_v18 = vmul.f32 %v2915_v5, %v2757_v21  ;;  %2313 = vmatprep.mubr.msk.bf16.mxu0 %vm401_vm4, %v2444_v28 }
 0x58a   : > { %1382 = vmatpush1.bf16.msra.mxu0 %v1115_v16  ;;  %v1269_v52 = vpack.c.bf16 %v1266_v59, %v1263_v0  ;;  %v1237_v16 = vmul.f32 %v2919_v63, %v2740_v9  ;;  %v1234_v22 = vmul.f32 %v2915_v5, %v2740_v9  ;;  %v1321_v37 = vmul.f32 %v2919_v63, %v2773_v40 }
 0x58b   : > { %1217 = vrot.lane.b32.xlu0 %v1210_v17, %s2506_s15  ;;  %v1271_v12 = vpack.c.bf16 %v1268_v61, %v1265_v8  ;;  %v1318_v41 = vmul.f32 %v2915_v5, %v2773_v40  ;;  %v1322_v45 = vmul.f32 %v2930_v60, %v2765_v31  ;;  %v1317_v63 = vmul.f32 %v2926_v54, %v2767_v36  ;;  %v2310_v60 = vld [vmem:[%s3370_s5 + $0x18] sm:$0xff] }
 0x58c   : > { %1219 = vrot.lane.b32.xlu1 %v2936_v6, %s2506_s15  ;;  %v1240_v27 = vpack.c.bf16 %v1237_v16, %v1234_v22 }
 0x58f   : > { %1161 = vrot.lane.b32.xlu0 %v1155_v25, %s2507_s16  ;;  %v1270_v25 = vpack.c.bf16 %v1267_v15, %v1264_v18 }
 0x590   : > { %1133 = vrot.lane.b32.xlu1 %v1210_v17, %s2505_s14 }
 0x593   : > { %1195 = vrot.lane.b32.xlu0 %v1187_v42, %s2508_s19  ;;  %v1324_v42 = vpack.c.bf16 %v1321_v37, %v1318_v41 }
 0x594   : > { %1165 = vrot.lane.b32.xlu1 %v1157_v43, %s2507_s16  ;;  %v1320_v43 = vmul.f32 %v2932_v2, %v2767_v36  ;;  %v2309_v2 = vld [vmem:[%s3370_s5 + $0x10] sm:$0xff] }
 0x597   : > { %1163 = vrot.lane.b32.xlu0 %v1156_v20, %s2507_s16 }
 0x598   : > { %1191 = vrot.lane.b32.xlu1 %v1185_v19, %s2508_s19 }
 0x59b   : > { %1215 = vrot.lane.b32.xlu0 %v2940_v11, %s2506_s15 }
 0x59c   : > { %1245 = vrot.lane.b32.xlu1 %v1239_v23, %s2509_s20 }
 0x59f   : > { %1249 = vrot.lane.b32.xlu0 %v1241_v58, %s2509_s20 }
 0x5a0   : > { %1193 = vrot.lane.b32.xlu1 %v1186_v3, %s2508_s19 }
 0x5a3   : > { %1275 = vrot.lane.b32.xlu0 %v1269_v52, %s2510_s21 }
 0x5a4   : > { %1279 = vrot.lane.b32.xlu1 %v1271_v12, %s2510_s21 }
 0x5a7   : > { %1277 = vrot.lane.b32.xlu0 %v1270_v25, %s2510_s21 }
 0x5a8   : > { %1247 = vrot.lane.b32.xlu1 %v1240_v27, %s2509_s20 }
 0x5ab   : > { %1303 = vrot.lane.b32.xlu0 %v2936_v6, %s2511_s22  ;;  %v1319_v6 = vmul.f32 %v2928_v56, %v2765_v31 }
 0x5ac   : > { %1301 = vrot.lane.b32.xlu1 %v1210_v17, %s2511_s22  ;;  %v1323_v17 = vpack.c.bf16 %v1320_v43, %v1317_v63 }
 0x5ad   : > { %v1325_v5 = vpack.c.bf16 %v1322_v45, %v1319_v6 }
 0x5af   : > { %1331 = vrot.lane.b32.xlu0 %v1324_v42, %s2513_s26 }
 0x5b0   : > { %1299 = vrot.lane.b32.xlu1 %v2940_v11, %s2511_s22 }
 0x5b3   : > { %1329 = vrot.lane.b32.xlu0 %v1323_v17, %s2513_s26 }
 0x5b4   : > { %1333 = vrot.lane.b32.xlu1 %v1325_v5, %s2513_s26 }
 0x5b7   : > { %1366 = vperm.xlu0 %2437, %v2310_v60  }
 0x5b8   : > { %1361 = vperm.xlu1 %2438, %v2309_v2   ;;  %v2446_v2 = vld [vmem:[%s3369_s4 + $0x10] ss:$8 sps:$4 sm:$0xff]  }
 0x5f9   : > { %v1136_v54 = vpop.permute.xlu0 %1135 }
 0x5fa   : > { %v1132_v11 = vpop.permute.xlu1 %1131 }
 0x5fd   : > { %v1218_v56 = vpop.permute.xlu0 %1217 }
 0x5fe   : > { %v1220_v46 = vpop.permute.xlu1 %1219 }
 0x5ff   : > { %v1222_v8 = vsel %vm640_vm11, %v1218_v56, %v1220_v46 }
 0x601   : > { %v1162_v32 = vpop.permute.xlu0 %1161 }
 0x602   : > { %v1134_v33 = vpop.permute.xlu1 %1133 }
 0x603   : > { %v1137_v20 = vsel %vm527_vm8, %v1132_v11, %v1134_v33  ;;  %v1138_v19 = vsel %vm527_vm8, %v1134_v33, %v1136_v54 }
 0x604   : > { %1383 = vmatprep.subr.bf16.mxu0 %v1138_v19 }
 0x605   : > { %1384 = vmatpush1.bf16.msra.mxu0 %v1137_v20  ;;  %v1196_v26 = vpop.permute.xlu0 %1195 }
 0x606   : > { %v1166_v34 = vpop.permute.xlu1 %1165 }
 0x609   : > { %v1164_v23 = vpop.permute.xlu0 %1163 }
 0x60a   : > { %v1192_v24 = vpop.permute.xlu1 %1191  ;;  %v1167_v47 = vsel %vm576_vm9, %v1162_v32, %v1164_v23  ;;  %v1168_v4 = vsel %vm576_vm9, %v1164_v23, %v1166_v34 }
 0x60b   : > { %1385 = vmatprep.subr.bf16.mxu0 %v1168_v4 }
 0x60c   : > { %1386 = vmatpush1.bf16.msra.mxu0 %v1167_v47 }
 0x60d   : > { %v1216_v7 = vpop.permute.xlu0 %1215 }
 0x60e   : > { %v1246_v58 = vpop.permute.xlu1 %1245  ;;  %v1221_v15 = vsel %vm640_vm11, %v1216_v7, %v1218_v56 }
 0x611   : > { %v1250_v3 = vpop.permute.xlu0 %1249 }
 0x612   : > { %v1194_v59 = vpop.permute.xlu1 %1193 }
 0x613   : > { %v1197_v61 = vsel %vm615_vm10, %v1192_v24, %v1194_v59  ;;  %v1198_v0 = vsel %vm615_vm10, %v1194_v59, %v1196_v26 }
 0x614   : > { %1387 = vmatprep.subr.bf16.mxu0 %v1198_v0 }
 0x615   : > { %1388 = vmatpush1.bf16.msra.mxu0 %v1197_v61  ;;  %v1276_v52 = vpop.permute.xlu0 %1275 }
 0x616   : > { %v1280_v12 = vpop.permute.xlu1 %1279  ;;  %1389 = vmatprep.subr.bf16.mxu0 %v1222_v8 }
 0x619   : > { %1390 = vmatpush1.bf16.msra.mxu0 %v1221_v15  ;;  %v1278_v16 = vpop.permute.xlu0 %1277 }
 0x61a   : > { %v1248_v18 = vpop.permute.xlu1 %1247  ;;  %v1282_v27 = vsel %vm720_vm13, %v1278_v16, %v1280_v12  ;;  %v1281_v41 = vsel %vm720_vm13, %v1276_v52, %v1278_v16  ;;  %v2314_v16 = vld [vmem:[%s3371_s6 + $0x2] sm:$0x3] }
 0x61b   : > { %v1251_v22 = vsel %vm680_vm12, %v1246_v58, %v1248_v18  ;;  %v1252_v25 = vsel %vm680_vm12, %v1248_v18, %v1250_v3  ;;  %v2447_v18 = vld [vmem:[%s3373_s8 + $0x10] sm:$0xff]  }
 0x61c   : > { %1391 = vmatprep.subr.bf16.mxu0 %v1252_v25 }
 0x61d   : > { %1392 = vmatpush1.bf16.msra.mxu0 %v1251_v22  ;;  %v1304_v28 = vpop.permute.xlu0 %1303  ;;  %v2317_v22 = vld [vmem:[%s3372_s7 + $0x1] ss:$0 sm:$0xff] }
 0x61e   : > { %v1302_v37 = vpop.permute.xlu1 %1301  ;;  %1393 = vmatprep.subr.bf16.mxu0 %v1282_v27 }
 0x61f   : > { %v1306_v42 = vsel %vm745_vm14, %v1302_v37, %v1304_v28 }
 0x621   : > { %1394 = vmatpush1.bf16.msra.mxu0 %v1281_v41  ;;  %v1332_v43 = vpop.permute.xlu0 %1331 }
 0x622   : > { %v1300_v45 = vpop.permute.xlu1 %1299  ;;  %1395 = vmatprep.subr.bf16.mxu0 %v1306_v42 }
 0x623   : > { %v1305_v63 = vsel %vm745_vm14, %v1300_v45, %v1302_v37 }
 0x625   : > { %1396 = vmatpush1.bf16.msra.mxu0 %v1305_v63  ;;  %v1330_v6 = vpop.permute.xlu0 %1329  ;;  %v2448_v63 = vld [vmem:[%s3373_s8 + $0x18] sm:$0xff]  }
 0x626   : > { %v1334_v17 = vpop.permute.xlu1 %1333  ;;  %v1335_v5 = vsel %vm785_vm15, %v1330_v6, %v1332_v43 }
 0x627   : > { %v1336_v60 = vsel %vm785_vm15, %v1332_v43, %v1334_v17 }
 0x628   : > { %1397 = vmatprep.subr.bf16.mxu0 %v1336_v60 }
 0x629   : > { %1398 = vmatpush1.bf16.msra.mxu0 %v1335_v5 }
 0x62a   : > { %2389 = vmatprep.subr.bf16.mxu0 %v2498_v1 }
 0x62c   : > { %1414 = vmatmul.mubr.bf16.vlgmr.msra.gmra.mrb[12].mxu0 %v2446_v2 }
 0x62d   : > { %2391 = vmatprep.mubr.msk.bf16.mxu0 %vm2514_vm1, %v2498_v1 }
 0x636   : > { %v1367_v32 = vpop.permute.xlu0 %1366 }
 0x637   : > { %v1362_v54 = vpop.permute.xlu1 %1361 }
 0x6ff   : > { %v1415_v11 = vpop.f32.mrb[12].mxu0 }
 0x700   : > { %v3070_v46 = vadd.f32 %v1415_v11, %v1362_v54  ;;  %v1417_v56 = vpop.f32.mrb[13].mxu0 }
 0x701   : > { %v3072_v33 = vadd.f32 %v1417_v56, %v1362_v54  ;;  %v1419_v20 = vpop.f32.mrb[14].mxu0 }
 0x702   : > { %v1424_v19 = vmax.f32 %v3070_v46, 0.0  ;;  %v3075_v26 = vadd.f32 %v1419_v20, %v1367_v32  ;;  %v1421_v34 = vpop.f32.mrb[15].mxu0 }
 0x703   : > { %v1425_v23 = vmax.f32 %v3072_v33, 0.0  ;;  %v3078_v24 = vadd.f32 %v1421_v34, %v1367_v32 }
 0x704   : > { %v1428_v1 = vadd.f32 %v1424_v19, %v2894_v48  ;;  %v1426_v47 = vmax.f32 %v3075_v26, 0.0 }
 0x705   : > { %v1429_v4 = vadd.f32 %v1425_v23, %v2896_v51  ;;  %v1427_v7 = vmax.f32 %v3078_v24, 0.0 }
 0x706   : > { %v1430_v58 = vadd.f32 %v1426_v47, %v2904_v53 }
 0x707   : > { %v1431_v3 = vadd.f32 %v1427_v7, %v2906_v55  ;;  %v1432_v59 = vadd.f32 %v1429_v4, %v1428_v1 }
 0x709   : > { %1433 = vadd.xlane.f32.xlu1 %v1432_v59  ;;  %v1435_v61 = vadd.f32 %v1431_v3, %v1430_v58 }
 0x70b   : > { %1436 = vadd.xlane.f32.xlu0 %v1435_v61 }
 0x796   : > { %v1434_v0 = vpop.xlane.xlu1 %1433 }
 0x797   : > { %v1438_v52 = vmul.f32 0.00390625, %v1434_v0 }
 0x798   : > { %v1437_v8 = vpop.xlane.xlu0 %1436 }
 0x799   : > { %v1439_v12 = vmul.f32 0.00390625, %v1437_v8 }
 0x79b   : > { %v1442_v15 = vpack.c.bf16 %v1439_v12, %v1438_v52 }
 0x79d   : > { %2378 = vmatpush3.bf16.msra.mxu1 %v1442_v15 }
 0x7a0   : > { %2380 = vmatmul.mubr.msk.bf16.vlgmr.msra.gmra.mrb[4].mxu1 %vm401_vm4, %v2314_v16 }
 0x7a1   : > { %2385 = vmatprep.mubr.msk.bf16.mxu1 %vm961_vm3, %v2447_v18 }
 0x873   : > { %v1480_v25 = vpop.f32.mrb[4].mxu1 }
 0x874   : > { %vm1486_vm7 = vcmp.ge.f32.partialorder %v1480_v25, 0.0  ;;  %v1495_v27 = vmul.f32 %v2317_v22, %v1480_v25  ;;  %v2381_v28 = vpop.f32.mrb[5].mxu1 }
 0x875   : > { %v1483_v37 = vpop.f32.mrb[6].mxu1 }
 0x876   : > { %v1496_v41 = vsel %vm1486_vm7, %v1480_v25, %v1495_v27  ;;  %v2382_v42 = vpop.f32.mrb[7].mxu1 }
 0x877   : > { %v1502_v43 = vpack.c.bf16 %v1496_v41, %v1496_v41 }
 0x879   : > { %2410 = vmatprep.subr.msk.bf16.mxu1 %vm968_vm6, %v1502_v43  ;;  %v1520_v45 = vsel %vm968_vm6, %v1502_v43, 0 }
 0x87a   : > { %2384 = vmatpush3.bf16.msra.mxu1 %v1520_v45 }
 0x87d   : > { %2386 = vmatmul.mubr.msk.bf16.vlgmr.msra.gmra.mrb[8].mxu1 %vm961_vm3, %v2448_v63 }
 0x950   : > { %v2387_v6 = vpop.f32.mrb[8].mxu1 }
 0x951   : > { %v1556_v17 = vpop.f32.mrb[9].mxu1 }
 0x952   : > { %v1571_v5 = vmax.f32 %v1556_v17, %v2387_v6  ;;  %v2388_v60 = vpop.f32.mrb[10].mxu1 }
 0x953   : > { %v1559_v2 = vpop.f32.mrb[11].mxu1 }
 0x954   : > { %v1573_v54 = vsub.f32 %v1556_v17, %v1571_v5  ;;  %v1579_v11 = vsub.f32 %v2387_v6, %v1571_v5  ;;  %v1572_v56 = vmax.f32 %v1559_v2, %v2388_v60 }
 0x956   : > { %v1575_v32 = vmul.f32 1.442695, %v1573_v54  ;;  %v1581_v20 = vmul.f32 1.442695, %v1579_v11  ;;  %v1574_v34 = vsub.f32 %v1559_v2, %v1572_v56  ;;  %v1580_v1 = vsub.f32 %v2388_v60, %v1572_v56 }
 0x958   : > { %2466 = vpow2.f32 %v1575_v32  ;;  %v1577_v4 = vmul.f32 1.442695, %v1574_v34  ;;  %v1583_v58 = vmul.f32 1.442695, %v1580_v1 }
 0x959   : > { %2468 = vpow2.f32 %v1581_v20 }
 0x95a   : > { %2470 = vpow2.f32 %v1577_v4 }
 0x95b   : > { %2472 = vpow2.f32 %v1583_v58 }
 0x962   : > { %v2467_v3 = vpop.eup %2466 }
 0x963   : > { %v2469_v59 = vpop.eup %2468 }
 0x964   : > { %v2471_v61 = vpop.eup %2470  ;;  %v1585_v0 = vadd.f32 %v2469_v59, %v2467_v3 }
 0x965   : > { %v2473_v8 = vpop.eup %2472 }
 0x966   : > { %2474 = vrcp.f32 %v1585_v0  ;;  %v1586_v52 = vadd.f32 %v2473_v8, %v2471_v61 }
 0x968   : > { %2476 = vrcp.f32 %v1586_v52 }
 0x970   : > { %v2475_v12 = vpop.eup %2474 }
 0x971   : > { %v1589_v15 = vmul.f32 %v2475_v12, %v2467_v3  ;;  %v1605_v16 = vmul.f32 %v2475_v12, %v2469_v59 }
 0x972   : > { %v2477_v18 = vpop.eup %2476 }
 0x973   : > { %1593 = vperm.xlu0 %2437, %v1589_v15   ;;  %v1590_v22 = vmul.f32 %v2477_v18, %v2471_v61  ;;  %v1606_v25 = vmul.f32 %v2477_v18, %v2473_v8 }
 0x975   : > { %1598 = vperm.xlu1 %2438, %v1590_v22  }
 0x977   : > { %1614 = vperm.xlu0 %2437, %v1606_v25  }
 0x979   : > { %1609 = vperm.xlu1 %2438, %v1605_v16  }
 0x9f2   : > { %v1594_v27 = vpop.permute.xlu0 %1593 }
 0x9f3   : > { %v1601_v42 = vmul.f32 %v1594_v27, %v2894_v48  ;;  %v1602_v43 = vmul.f32 %v1594_v27, %v2896_v51 }
 0x9f4   : > { %v1599_v28 = vpop.permute.xlu1 %1598 }
 0x9f5   : > { %v1603_v48 = vmul.f32 %v1599_v28, %v2904_v53  ;;  %v1604_v51 = vmul.f32 %v1599_v28, %v2906_v55 }
 0x9f6   : > { %v1615_v37 = vpop.permute.xlu0 %1614 }
 0x9f7   : > { %v1619_v6 = vmul.f32 %v1615_v37, %v1426_v47  ;;  %v1620_v17 = vmul.f32 %v1615_v37, %v1427_v7 }
 0x9f8   : > { %v1610_v41 = vpop.permute.xlu1 %1609 }
 0x9f9   : > { %v1617_v45 = vmul.f32 %v1610_v41, %v1424_v19  ;;  %v1618_v63 = vmul.f32 %v1610_v41, %v1425_v23  ;;  %v3131_v46 = vadd.f32 %v1619_v6, %v1603_v48  ;;  %v3133_v33 = vadd.f32 %v1620_v17, %v1604_v51 }
 0x9fb   : > { %v3121_v5 = vadd.f32 %v1617_v45, %v1601_v42  ;;  %v3123_v60 = vadd.f32 %v1618_v63, %v1602_v43 }
 0x9fd   : > { %1637 = vrot.lane.b32.xlu0 %v3123_v60, %s2499_s25  ;;  %1635 = vrot.lane.b32.xlu1 %v3121_v5, %s2499_s25 }
 0xa01   : > { %1641 = vrot.lane.b32.xlu0 %v3133_v33, %s2499_s25  ;;  %1639 = vrot.lane.b32.xlu1 %v3131_v46, %s2499_s25 }
 0xa6f   : > { %v1638_v19 = vpop.permute.xlu0 %1637  ;;  %v1636_v53 = vpop.permute.xlu1 %1635 }
 0xa70   : > { %1653 = vst.msk [vmem:[#allocation2 + $0x10] sm:$0xff] %vm449_vm0, %v1638_v19  ;;  %v3141_v55 = vsel %vm449_vm0, %v1636_v53, %v1638_v19 }
 0xa71   : > { %1651 = vst.msk [vmem:[#allocation2] sm:$0xff] %vm479_vm2, %v1636_v53  ;;  %v1662_v47 = vmul.f32 %v3141_v55, %v2617_v13  ;;  %v1700_v18 = vmul.f32 %v3141_v55, %v2693_v44  ;;  %v1730_v41 = vmul.f32 %v3141_v55, %v2718_v57  ;;  %v1814_v51 = vmul.f32 %v3141_v55, %v2757_v21  ;;  %v2449_v53 = vld [vmem:[%s3369_s4 + $0x24] ss:$8 sps:$4 sm:$0xff]  }
 0xa72   : > { %2332 = vmatprep.mubr.msk.bf16.mxu1 %vm401_vm4, %v2449_v53 }
 0xa73   : > { %v1642_v26 = vpop.permute.xlu0 %1641  ;;  %v1640_v23 = vpop.permute.xlu1 %1639 }
 0xa74   : > { %1656 = vst.msk [vmem:[#allocation2 + $0x28] sm:$0xff] %vm449_vm0, %v1642_v26  ;;  %v3146_v24 = vsel %vm449_vm0, %v1640_v23, %v1642_v26 }
 0xa75   : > { %1654 = vst.msk [vmem:[#allocation2 + $0x18] sm:$0xff] %vm479_vm2, %v1640_v23  ;;  %v1664_v7 = vmul.f32 %v3146_v24, %v2617_v13  ;;  %v1760_v58 = vpack.c.bf16 %v3146_v24, %v3141_v55  ;;  %v1817_v17 = vmul.f32 %v3146_v24, %v2757_v21  ;;  %v1787_v48 = vmul.f32 %v3146_v24, %v2740_v9 }
 0xa76   : > { %v1871_v26 = vmul.f32 %v3146_v24, %v2773_v40 }
 0xa77   : > { %v1666_v2 = vpack.c.bf16 %v1664_v7, %v1662_v47  ;;  %v3155_v11 = vld [vmem:[#allocation2 + $0x10] sm:$0xff]  ;;  %v1820_v19 = vpack.c.bf16 %v1817_v17, %v1814_v51 }
 0xa78   : > { %v3153_v54 = vld [vmem:[#allocation2] sm:$0xff]  ;;  %v1731_v8 = vmul.f32 %v3155_v11, %v2675_v38  ;;  %v1701_v52 = vmul.f32 %v3155_v11, %v2653_v30  ;;  %v1869_v7 = vmul.f32 %v3155_v11, %v2765_v31 }
 0xa79   : > { %1931 = vmatprep.subr.bf16.mxu1 %v1666_v2  ;;  %v1661_v13 = vmul.f32 %v3153_v54, %v2619_v14  ;;  %v1783_v27 = vmul.f32 %v3153_v54, %v2701_v49  ;;  %v1813_v63 = vmul.f32 %v3153_v54, %v2742_v10 }
 0xa7b   : > { %v3157_v56 = vld [vmem:[#allocation2 + $0x28] sm:$0xff] }
 0xa7c   : > { %v3159_v32 = vld [vmem:[#allocation2 + $0x18] sm:$0xff]  ;;  %v3163_v20 = vpack.c.bf16 %v3157_v56, %v3155_v11  ;;  %v1734_v61 = vmul.f32 %v3157_v56, %v2675_v38  ;;  %v1704_v0 = vmul.f32 %v3157_v56, %v2653_v30  ;;  %v1729_v38 = vmul.f32 %v3153_v54, %v2669_v35 }
 0xa7d   : > { %v3167_v34 = vpack.c.bf16 %v3159_v32, %v3153_v54  ;;  %v1663_v1 = vmul.f32 %v3159_v32, %v2619_v14  ;;  %v1702_v3 = vmul.f32 %v3159_v32, %v2651_v29  ;;  %v1699_v14 = vmul.f32 %v3153_v54, %v2651_v29 }
 0xa7e   : > { %1685 = vrot.lane.b32.xlu0 %v3163_v20, %s2505_s14  ;;  %v1737_v12 = vpack.c.bf16 %v1734_v61, %v1731_v8  ;;  %v1707_v15 = vpack.c.bf16 %v1704_v0, %v1701_v52  ;;  %v1703_v29 = vmul.f32 %v3146_v24, %v2693_v44  ;;  %v1732_v16 = vmul.f32 %v3159_v32, %v2669_v35 }
 0xa7f   : > { %1681 = vrot.lane.b32.xlu1 %v3167_v34, %s2505_s14  ;;  %v1665_v4 = vpack.c.bf16 %v1663_v1, %v1661_v13  ;;  %v1705_v59 = vpack.c.bf16 %v1702_v3, %v1699_v14  ;;  %v1786_v25 = vmul.f32 %v3159_v32, %v2701_v49  ;;  %v1788_v37 = vmul.f32 %v3157_v56, %v2705_v50 }
 0xa80   : > { %v1706_v22 = vpack.c.bf16 %v1703_v29, %v1700_v18  ;;  %v1735_v30 = vpack.c.bf16 %v1732_v16, %v1729_v38  ;;  %v1733_v44 = vmul.f32 %v3146_v24, %v2718_v57  ;;  %v1785_v35 = vmul.f32 %v3155_v11, %v2705_v50 }
 0xa81   : > { %1932 = vmatpush1.bf16.msra.mxu1 %v1665_v4  ;;  %v1789_v28 = vpack.c.bf16 %v1786_v25, %v1783_v27  ;;  %v1816_v43 = vmul.f32 %v3159_v32, %v2742_v10  ;;  %v1818_v45 = vmul.f32 %v3157_v56, %v2726_v62  ;;  %v1815_v50 = vmul.f32 %v3155_v11, %v2726_v62 }
 0xa82   : > { %1767 = vrot.lane.b32.xlu0 %v1760_v58, %s2506_s15  ;;  %v1791_v42 = vpack.c.bf16 %v1788_v37, %v1785_v35  ;;  %v1736_v49 = vpack.c.bf16 %v1733_v44, %v1730_v41  ;;  %v1784_v10 = vmul.f32 %v3141_v55, %v2740_v9  ;;  %v1868_v9 = vmul.f32 %v3141_v55, %v2773_v40  ;;  %v2329_v55 = vld [vmem:[%s3370_s5 + $0x28] sm:$0xff] }
 0xa83   : > { %1769 = vrot.lane.b32.xlu1 %v3163_v20, %s2506_s15  ;;  %v1819_v6 = vpack.c.bf16 %v1816_v43, %v1813_v63  ;;  %v1821_v57 = vpack.c.bf16 %v1818_v45, %v1815_v50  ;;  %v1870_v23 = vmul.f32 %v3159_v32, %v2767_v36  ;;  %v1872_v47 = vmul.f32 %v3157_v56, %v2765_v31  ;;  %v2328_v56 = vld [vmem:[%s3370_s5 + $0x20] sm:$0xff] }
 0xa84   : > { %v1790_v62 = vpack.c.bf16 %v1787_v48, %v1784_v10  ;;  %v1874_v21 = vpack.c.bf16 %v1871_v26, %v1868_v9  ;;  %v1867_v24 = vmul.f32 %v3153_v54, %v2767_v36 }
 0xa85   : > { %v1875_v40 = vpack.c.bf16 %v1872_v47, %v1869_v7 }
 0xa86   : > { %1711 = vrot.lane.b32.xlu0 %v1705_v59, %s2507_s16  ;;  %v1873_v2 = vpack.c.bf16 %v1870_v23, %v1867_v24 }
 0xa87   : > { %1683 = vrot.lane.b32.xlu1 %v1760_v58, %s2505_s14 }
 0xa8a   : > { %1745 = vrot.lane.b32.xlu0 %v1737_v12, %s2508_s19 }
 0xa8b   : > { %1715 = vrot.lane.b32.xlu1 %v1707_v15, %s2507_s16 }
 0xa8e   : > { %1713 = vrot.lane.b32.xlu0 %v1706_v22, %s2507_s16 }
 0xa8f   : > { %1741 = vrot.lane.b32.xlu1 %v1735_v30, %s2508_s19 }
 0xa92   : > { %1765 = vrot.lane.b32.xlu0 %v3167_v34, %s2506_s15 }
 0xa93   : > { %1795 = vrot.lane.b32.xlu1 %v1789_v28, %s2509_s20 }
 0xa96   : > { %1799 = vrot.lane.b32.xlu0 %v1791_v42, %s2509_s20 }
 0xa97   : > { %1743 = vrot.lane.b32.xlu1 %v1736_v49, %s2508_s19 }
 0xa9a   : > { %1825 = vrot.lane.b32.xlu0 %v1819_v6, %s2510_s21 }
 0xa9b   : > { %1829 = vrot.lane.b32.xlu1 %v1821_v57, %s2510_s21  ;;  %v2451_v57 = vld [vmem:[%s3369_s4 + $0x20] ss:$8 sps:$4 sm:$0xff]  }
 0xa9e   : > { %1827 = vrot.lane.b32.xlu0 %v1820_v19, %s2510_s21 }
 0xa9f   : > { %1797 = vrot.lane.b32.xlu1 %v1790_v62, %s2509_s20  ;;  %s2349_s20 = sshll.u32 %s3378_s18, 4 }
 0xaa2   : > { %1853 = vrot.lane.b32.xlu0 %v3163_v20, %s2511_s22 }
 0xaa3   : > { %1851 = vrot.lane.b32.xlu1 %v1760_v58, %s2511_s22 }
 0xaa6   : > { %1881 = vrot.lane.b32.xlu0 %v1874_v21, %s2513_s26 }
 0xaa7   : > { %1849 = vrot.lane.b32.xlu1 %v3167_v34, %s2511_s22 }
 0xaaa   : > { %1879 = vrot.lane.b32.xlu0 %v1873_v2, %s2513_s26 }
 0xaab   : > { %1883 = vrot.lane.b32.xlu1 %v1875_v40, %s2513_s26  ;;  %s386_s26 = scalar_lea.vmem %s3376_s11, %s2349_s20 }
 0xaae   : > { %1916 = vperm.xlu0 %2437, %v2329_v55  }
 0xaaf   : > { %1911 = vperm.xlu1 %2438, %v2328_v56  }
 0xaf0   : > { %v1686_v36 = vpop.permute.xlu0 %1685 }
 0xaf1   : > { %v1682_v54 = vpop.permute.xlu1 %1681 }
 0xaf4   : > { %v1768_v31 = vpop.permute.xlu0 %1767 }
 0xaf5   : > { %v1770_v32 = vpop.permute.xlu1 %1769 }
 0xaf6   : > { %v1772_v29 = vsel %vm640_vm11, %v1768_v31, %v1770_v32 }
 0xaf8   : > { %v1712_v11 = vpop.permute.xlu0 %1711 }
 0xaf9   : > { %v1684_v20 = vpop.permute.xlu1 %1683 }
 0xafa   : > { %v1687_v34 = vsel %vm527_vm8, %v1682_v54, %v1684_v20  ;;  %v1688_v13 = vsel %vm527_vm8, %v1684_v20, %v1686_v36 }
 0xafb   : > { %1933 = vmatprep.subr.bf16.mxu1 %v1688_v13  ;;  %v2333_v13 = vld [vmem:[%s3371_s6 + $0x4] sm:$0x3] }
 0xafc   : > { %1934 = vmatpush1.bf16.msra.mxu1 %v1687_v34  ;;  %v1746_v1 = vpop.permute.xlu0 %1745 }
 0xafd   : > { %v1716_v4 = vpop.permute.xlu1 %1715 }
 0xb00   : > { %v1714_v58 = vpop.permute.xlu0 %1713 }
 0xb01   : > { %v1742_v3 = vpop.permute.xlu1 %1741  ;;  %v1717_v14 = vsel %vm576_vm9, %v1712_v11, %v1714_v58  ;;  %v1718_v59 = vsel %vm576_vm9, %v1714_v58, %v1716_v4  ;;  %v2336_v4 = vld [vmem:[%s3372_s7 + $0x2] ss:$0 sm:$0xff] }
 0xb02   : > { %1935 = vmatprep.subr.bf16.mxu1 %v1718_v59 }
 0xb03   : > { %1936 = vmatpush1.bf16.msra.mxu1 %v1717_v14 }
 0xb04   : > { %v1766_v61 = vpop.permute.xlu0 %1765 }
 0xb05   : > { %v1796_v0 = vpop.permute.xlu1 %1795  ;;  %v1771_v38 = vsel %vm640_vm11, %v1766_v61, %v1768_v31 }
 0xb08   : > { %v1800_v8 = vpop.permute.xlu0 %1799 }
 0xb09   : > { %v1744_v52 = vpop.permute.xlu1 %1743 }
 0xb0a   : > { %v1747_v12 = vsel %vm615_vm10, %v1742_v3, %v1744_v52  ;;  %v1748_v15 = vsel %vm615_vm10, %v1744_v52, %v1746_v1  ;;  %v2452_v1 = vld [vmem:[%s3373_s8 + $0x20] sm:$0xff]  }
 0xb0b   : > { %1937 = vmatprep.subr.bf16.mxu1 %v1748_v15 }
 0xb0c   : > { %1938 = vmatpush1.bf16.msra.mxu1 %v1747_v12  ;;  %v1826_v16 = vpop.permute.xlu0 %1825  ;;  %v2453_v12 = vld [vmem:[%s3373_s8 + $0x28] sm:$0xff]  }
 0xb0d   : > { %v1830_v18 = vpop.permute.xlu1 %1829  ;;  %1939 = vmatprep.subr.bf16.mxu1 %v1772_v29 }
 0xb10   : > { %1940 = vmatpush1.bf16.msra.mxu1 %v1771_v38  ;;  %v1828_v22 = vpop.permute.xlu0 %1827 }
 0xb11   : > { %v1798_v30 = vpop.permute.xlu1 %1797  ;;  %v1832_v28 = vsel %vm720_vm13, %v1828_v22, %v1830_v18  ;;  %v1831_v35 = vsel %vm720_vm13, %v1826_v16, %v1828_v22 }
 0xb12   : > { %v1801_v25 = vsel %vm680_vm12, %v1796_v0, %v1798_v30  ;;  %v1802_v27 = vsel %vm680_vm12, %v1798_v30, %v1800_v8 }
 0xb13   : > { %1941 = vmatprep.subr.bf16.mxu1 %v1802_v27 }
 0xb14   : > { %1942 = vmatpush1.bf16.msra.mxu1 %v1801_v25  ;;  %v1854_v37 = vpop.permute.xlu0 %1853 }
 0xb15   : > { %v1852_v44 = vpop.permute.xlu1 %1851  ;;  %1943 = vmatprep.subr.bf16.mxu1 %v1832_v28 }
 0xb16   : > { %v1856_v41 = vsel %vm745_vm14, %v1852_v44, %v1854_v37 }
 0xb18   : > { %1944 = vmatpush1.bf16.msra.mxu1 %v1831_v35  ;;  %v1882_v42 = vpop.permute.xlu0 %1881 }
 0xb19   : > { %v1850_v49 = vpop.permute.xlu1 %1849  ;;  %1945 = vmatprep.subr.bf16.mxu1 %v1856_v41 }
 0xb1a   : > { %v1855_v43 = vsel %vm745_vm14, %v1850_v49, %v1852_v44 }
 0xb1c   : > { %1946 = vmatpush1.bf16.msra.mxu1 %v1855_v43  ;;  %v1880_v45 = vpop.permute.xlu0 %1879 }
 0xb1d   : > { %v1884_v63 = vpop.permute.xlu1 %1883  ;;  %v1885_v50 = vsel %vm785_vm15, %v1880_v45, %v1882_v42 }
 0xb1e   : > { %v1886_v6 = vsel %vm785_vm15, %v1882_v42, %v1884_v63 }
 0xb1f   : > { %1947 = vmatprep.subr.bf16.mxu1 %v1886_v6 }
 0xb20   : > { %1948 = vmatpush1.bf16.msra.mxu1 %v1885_v50 }
 0xb23   : > { %1964 = vmatmul.mubr.bf16.vlgmr.msra.gmra.mrb[12].mxu1 %v2451_v57 }
 0xb2d   : > { %v1917_v19 = vpop.permute.xlu0 %1916 }
 0xb2e   : > { %v1912_v17 = vpop.permute.xlu1 %1911 }
 0xbf6   : > { %v1965_v48 = vpop.f32.mrb[12].mxu1 }
 0xbf7   : > { %v3294_v51 = vadd.f32 %v1965_v48, %v1912_v17  ;;  %v1967_v10 = vpop.f32.mrb[13].mxu1 }
 0xbf8   : > { %v3296_v62 = vadd.f32 %v1967_v10, %v1912_v17  ;;  %v1969_v53 = vpop.f32.mrb[14].mxu1 }
 0xbf9   : > { %v1974_v26 = vmax.f32 %v3294_v51, 0.0  ;;  %v3299_v9 = vadd.f32 %v1969_v53, %v1917_v19  ;;  %v1971_v21 = vpop.f32.mrb[15].mxu1  ;;  %v395_v53 = vld [vmem:[%s3368_s3] sm:$0xff] }
 0xbfa   : > { %v1975_v23 = vmax.f32 %v3296_v62, 0.0  ;;  %v3302_v47 = vadd.f32 %v1971_v21, %v1917_v19  ;;  %v2178_v19 = vld [vmem:[%s3375_s10] sm:$0xff] }
 0xbfb   : > { %v1978_v24 = vadd.f32 %v1974_v26, %v3121_v5  ;;  %v1976_v7 = vmax.f32 %v3299_v9, 0.0 }
 0xbfc   : > { %v1979_v2 = vadd.f32 %v1975_v23, %v3123_v60  ;;  %v1977_v40 = vmax.f32 %v3302_v47, 0.0 }
 0xbfd   : > { %v1980_v55 = vadd.f32 %v1976_v7, %v3131_v46 }
 0xbfe   : > { %v1981_v56 = vadd.f32 %v1977_v40, %v3133_v33  ;;  %v1982_v36 = vadd.f32 %v1979_v2, %v1978_v24 }
 0xc00   : > { %1983 = vadd.xlane.f32.xlu1 %v1982_v36  ;;  %v1985_v54 = vadd.f32 %v1981_v56, %v1980_v55 }
 0xc02   : > { %1986 = vadd.xlane.f32.xlu0 %v1985_v54 }
 0xc8d   : > { %v1984_v32 = vpop.xlane.xlu1 %1983 }
 0xc8e   : > { %v1988_v11 = vmul.f32 0.00390625, %v1984_v32 }
 0xc8f   : > { %v1987_v31 = vpop.xlane.xlu0 %1986 }
 0xc90   : > { %v1989_v20 = vmul.f32 0.00390625, %v1987_v31 }
 0xc92   : > { %v1992_v34 = vpack.c.bf16 %v1989_v20, %v1988_v11 }
 0xc94   : > { %2390 = vmatpush3.bf16.msra.mxu0 %v1992_v34 }
 0xc97   : > { %2392 = vmatmul.mubr.msk.bf16.vlgmr.msra.gmra.mrb[16].mxu0 %vm401_vm4, %v2333_v13 }
 0xc98   : > { %2397 = vmatprep.mubr.msk.bf16.mxu0 %vm961_vm3, %v2452_v1 }
 0xd6a   : > { %v2030_v58 = vpop.f32.mrb[16].mxu0 }
 0xd6b   : > { %vm2036_vm0 = vcmp.ge.f32.partialorder %v2030_v58, 0.0  ;;  %v2045_v3 = vmul.f32 %v2336_v4, %v2030_v58  ;;  %v2393_v14 = vpop.f32.mrb[17].mxu0 }
 0xd6c   : > { %v2033_v59 = vpop.f32.mrb[18].mxu0 }
 0xd6d   : > { %v2046_v61 = vsel %vm2036_vm0, %v2030_v58, %v2045_v3  ;;  %v2394_v0 = vpop.f32.mrb[19].mxu0 }
 0xd6e   : > { %v2052_v8 = vpack.c.bf16 %v2046_v61, %v2046_v61 }
 0xd70   : > { %2411 = vmatprep.subr.msk.bf16.mxu0 %vm968_vm6, %v2052_v8  ;;  %v2070_v52 = vsel %vm968_vm6, %v2052_v8, 0 }
 0xd71   : > { %2396 = vmatpush3.bf16.msra.mxu0 %v2070_v52 }
 0xd74   : > { %2398 = vmatmul.mubr.msk.bf16.vlgmr.msra.gmra.mrb[20].mxu0 %vm961_vm3, %v2453_v12 }
 0xd75   : > { %2219 = vmatprep.mubr.bf16.mxu0 %v2512_v39 }
 0xe47   : > { %v2399_v15 = vpop.f32.mrb[20].mxu0 }
 0xe48   : > { %v2106_v29 = vpop.f32.mrb[21].mxu0 }
 0xe49   : > { %v2121_v16 = vmax.f32 %v2106_v29, %v2399_v15  ;;  %v2400_v18 = vpop.f32.mrb[22].mxu0 }
 0xe4a   : > { %v2109_v38 = vpop.f32.mrb[23].mxu0 }
 0xe4b   : > { %v2123_v22 = vsub.f32 %v2106_v29, %v2121_v16  ;;  %v2129_v30 = vsub.f32 %v2399_v15, %v2121_v16  ;;  %v2122_v25 = vmax.f32 %v2109_v38, %v2400_v18 }
 0xe4d   : > { %v2125_v27 = vmul.f32 1.442695, %v2123_v22  ;;  %v2131_v28 = vmul.f32 1.442695, %v2129_v30  ;;  %v2124_v37 = vsub.f32 %v2109_v38, %v2122_v25  ;;  %v2130_v44 = vsub.f32 %v2400_v18, %v2122_v25 }
 0xe4f   : > { %2478 = vpow2.f32 %v2125_v27  ;;  %v2127_v35 = vmul.f32 1.442695, %v2124_v37  ;;  %v2133_v41 = vmul.f32 1.442695, %v2130_v44 }
 0xe50   : > { %2480 = vpow2.f32 %v2131_v28 }
 0xe51   : > { %2482 = vpow2.f32 %v2127_v35 }
 0xe52   : > { %2484 = vpow2.f32 %v2133_v41 }
 0xe59   : > { %v2479_v42 = vpop.eup %2478 }
 0xe5a   : > { %v2481_v39 = vpop.eup %2480 }
 0xe5b   : > { %v2483_v49 = vpop.eup %2482  ;;  %v2135_v43 = vadd.f32 %v2481_v39, %v2479_v42 }
 0xe5c   : > { %v2485_v45 = vpop.eup %2484 }
 0xe5d   : > { %2486 = vrcp.f32 %v2135_v43  ;;  %v2136_v63 = vadd.f32 %v2485_v45, %v2483_v49 }
 0xe5f   : > { %2488 = vrcp.f32 %v2136_v63 }
 0xe67   : > { %v2487_v50 = vpop.eup %2486 }
 0xe68   : > { %v2139_v6 = vmul.f32 %v2487_v50, %v2479_v42  ;;  %v2155_v57 = vmul.f32 %v2487_v50, %v2481_v39 }
 0xe69   : > { %v2489_v17 = vpop.eup %2488 }
 0xe6a   : > { %2143 = vperm.xlu0 %2437, %v2139_v6   ;;  %v2140_v48 = vmul.f32 %v2489_v17, %v2483_v49  ;;  %v2156_v10 = vmul.f32 %v2489_v17, %v2485_v45 }
 0xe6c   : > { %2148 = vperm.xlu1 %2438, %v2140_v48  }
 0xe6e   : > { %2164 = vperm.xlu0 %2437, %v2156_v10  }
 0xe70   : > { %2159 = vperm.xlu1 %2438, %v2155_v57  }
 0xe72   : > { %2181 = vperm.xlu0 %2437, %v2178_v19  }
 0xe74   : > { %398 = vperm.xlu1 %2438, %v395_v53  }
 0xee9   : > { %v2144_v21 = vpop.permute.xlu0 %2143 }
 0xeea   : > { %v2151_v36 = vmul.f32 %v2144_v21, %v3121_v5  ;;  %v2152_v54 = vmul.f32 %v2144_v21, %v3123_v60  ;;  %v2175_v60 = vld [vmem:[%s3374_s9] sm:$0xf] }
 0xeeb   : > { %v2149_v24 = vpop.permute.xlu1 %2148 }
 0xeec   : > { %v2153_v31 = vmul.f32 %v2149_v24, %v3131_v46  ;;  %v2154_v11 = vmul.f32 %v2149_v24, %v3133_v33 }
 0xeed   : > { %v2165_v2 = vpop.permute.xlu0 %2164 }
 0xeee   : > { %v2169_v55 = vmul.f32 %v2165_v2, %v1976_v7  ;;  %v2170_v56 = vmul.f32 %v2165_v2, %v1977_v40 }
 0xeef   : > { %v2160_v32 = vpop.permute.xlu1 %2159 }
 0xef0   : > { %v2167_v20 = vmul.f32 %v2160_v32, %v1974_v26  ;;  %v2168_v9 = vmul.f32 %v2160_v32, %v1975_v23  ;;  %v2173_v7 = vadd.f32 %v2169_v55, %v2153_v31  ;;  %v2174_v34 = vadd.f32 %v2170_v56, %v2154_v11 }
 0xef1   : > { %v2182_v33 = vpop.permute.xlu0 %2181 }
 0xef2   : > { %v2171_v47 = vadd.f32 %v2167_v20, %v2151_v36  ;;  %v2172_v40 = vadd.f32 %v2168_v9, %v2152_v54 }
 0xef3   : > { %v399_v46 = vpop.permute.xlu1 %398 }
 0xef4   : > { %v2176_v13 = vpack.c.bf16 %v2173_v7, %v2171_v47  ;;  %v2177_v5 = vpack.c.bf16 %v2174_v34, %v2172_v40  ;;  %v2401_v51 = vadd.f32 %v2182_v33, %v399_v46 }
 0xef6   : > { %2187 = vmatprep.subr.bf16.mxu0 %v2177_v5 }
 0xef7   : > { %2188 = vmatpush1.bf16.msra.mxu0 %v2176_v13 }
 0xefa   : > { %2345 = vmatmul.mubr.msk.bf16.vlgmr.msra.gmra.mrb[0].mxu0 %vm401_vm4, %v2175_v60 }
 0xfcd   : > { %v2221_v62 = vpop.f32.mrb[0].mxu0 }
 0xfce   : > { %v2402_v26 = vadd.f32 %v2401_v51, %v2221_v62  ;;  %v2223_v23 = vpop.f32.mrb[1].mxu0 }
 0xfcf   : > { %v2404_v1 = vadd.f32 %v2401_v51, %v2223_v23  ;;  %v2225_v4 = vpop.f32.mrb[2].mxu0 }
 0xfd0   : > { %2230 = vst [vmem:[%s386_s26] sm:$0xff] %v2402_v26  ;;  %v2226_v58 = vpop.f32.mrb[3].mxu0 }
 0xfd1   : > { %2231 = vst [vmem:[%s386_s26 + $0x8] sm:$0xff] %v2404_v1 }
 0xfd2 PF: > { %s21_s17 = sadd.s32 1, %s2496_s17  }
 0xfd3   : > { %p18_p4 = scmp.ge.s32.totalorder %s21_s17, 4  }
 0xfd5   :  { %20 = sbr.rel (!%p18_p4) target bundleno = 1 (0x1), region = 105 }

</bundles_post_ra>
